<compile_context>
chip_gen: v7x
topology: tpu7x:2x2x1
jax: 0.10.0
libtpu: 0.0.40
codegen_flags: <defaults>
</compile_context>

<pallas_src>
import functools
import math

import jax
import jax.numpy as jnp
from jax.experimental import pallas as pl
from jax.experimental.pallas import tpu as pltpu


def _elu(v):
    # ELU with alpha = 1.0 (torch.nn.ELU default); runs in v.dtype.
    return jnp.where(v > 0, v, jnp.exp(v) - 1.0)


def _default_elementwise_dtype():
    """bf16 element-wise math on chips with a bf16 VPU/EUP (v6e/v7x), f32 otherwise."""
    try:
        kind = jax.devices()[0].device_kind.lower()
    except Exception:
        return jnp.float32
    if any(v in kind for v in ("v2", "v3", "v4", "v5")):
        return jnp.float32
    return jnp.bfloat16


def _round_up(v, m):
    return (v + m - 1) // m * m


def _padded_bytes(shape, itemsize):
    """VMEM footprint of an array with (sublane, lane) tile padding."""
    shape = tuple(int(d) for d in shape)
    if len(shape) == 1:
        shape = (1,) + shape
    lead = math.prod(shape[:-2]) if len(shape) > 2 else 1
    rows, cols = shape[-2], shape[-1]
    row_tile = 16 if itemsize == 2 else 8
    return lead * _round_up(rows, row_tile) * _round_up(cols, 128) * itemsize


# ---------------------------------------------------------------------------
# Fused EncBlock kernel: 3 ResUnits + final ELU + causal strided downsample.
# ---------------------------------------------------------------------------
def _enc_block_kernel(*refs, t_tile, t_out, stride, c_mid, dilations, l_ctx,
                      fold_shortcut, cdt):
    if fold_shortcut:
        (x_ref, w_in_ref, b_in_ref, w_out_ref, b_out_ref,
         w_ds_ref, b_ds_ref, o_ref, xb1, xb2, xb3, xb4) = refs
        w_sc_ref = b_sc_ref = None
    else:
        (x_ref, w_in_ref, b_in_ref, w_out_ref, b_out_ref, w_sc_ref, b_sc_ref,
         w_ds_ref, b_ds_ref, o_ref, xb1, xb2, xb3, xb4) = refs

    tt = t_tile
    C = c_mid
    t = pl.program_id(1)
    bufs = (xb1, xb2, xb3, xb4)
    l4 = l_ctx[3]

    # First T-tile of every batch element: the carry regions represent the
    # causal left zero-padding of every conv layer.
    @pl.when(t == 0)
    def _init_carries():
        for buf, l in zip(bufs, l_ctx):
            buf[0:l, :] = jnp.zeros((l, C), buf.dtype)

    def shift_carry(buf, l):
        # Keep the last `l` input rows of this layer for the next T-tile.
        tail = buf[tt:tt + l, :]          # load first (regions may overlap)
        buf[0:l, :] = tail

    def res_unit(i, buf, l, dil):
        # buf[l:] holds this ResUnit's input tile; buf[:l] the carried context.
        # The 3 taps of the dilated k=3 conv are stacked along the contraction
        # dim -> one MXU matmul (bf16 operands, f32 accumulation).
        taps = [buf[k * dil:k * dil + tt, :] for k in range(3)]
        xc = jnp.concatenate(taps, axis=1).astype(jnp.bfloat16)       # (tt, 3C)
        if fold_shortcut:
            # w_in_ref[i] is (3C, 2C): cols [:C] = dilated conv, cols [C:] =
            # shortcut 1x1 conv (only rows [2C:3C] non-zero; tap k=2 of xc is
            # exactly the ResUnit input).  One matmul + one merged bias+ELU.
            hs = jnp.dot(xc, w_in_ref[i], preferred_element_type=jnp.float32)
            a = _elu(hs.astype(cdt) + b_in_ref[i])                    # (tt, 2C)
            h1, sc = a[:, :C], a[:, C:]
        else:
            h_pre = jnp.dot(xc, w_in_ref[i], preferred_element_type=jnp.float32)
            sc_pre = jnp.dot(taps[2].astype(jnp.bfloat16), w_sc_ref[i],
                             preferred_element_type=jnp.float32)
            h1 = _elu(h_pre.astype(cdt) + b_in_ref[i])
            sc = _elu(sc_pre.astype(cdt) + b_sc_ref[i])
        h = jnp.dot(h1.astype(jnp.bfloat16), w_out_ref[i],
                    preferred_element_type=jnp.float32)
        h = _elu(h.astype(cdt) + b_out_ref[i])
        return sc + h                                                 # cdt

    # --- three ResUnits (dilations 1, 3, 9) ---
    y = x_ref[0]                                                      # (tt, C) bf16
    for i, (buf, l, dil) in enumerate(zip(bufs[:3], l_ctx[:3], dilations)):
        buf[l:, :] = y.astype(buf.dtype)
        y = res_unit(i, buf, l, dil)
        shift_carry(buf, l)

    # --- ELU + causal strided downsample conv (kernel = 2*stride) ---
    xb4[l4:, :] = _elu(y).astype(xb4.dtype)     # ELU once, outside the tap loop
    taps = [xb4[pl.ds(k, t_out, stride=stride), :] for k in range(2 * stride)]
    xd = jnp.concatenate(taps, axis=1).astype(jnp.bfloat16)           # (t_out, 2s*C)
    o = jnp.dot(xd, w_ds_ref[...], preferred_element_type=jnp.float32)
    o_ref[0] = (o + b_ds_ref[...]).astype(o_ref.dtype)
    shift_carry(xb4, l4)


# ---------------------------------------------------------------------------
# Core wrapper on (B, T, C) activations (channels on lanes).  Use this when
# chaining EncBlocks to avoid NCW<->NWC HBM transposes between blocks.
# ---------------------------------------------------------------------------
def enc_block_forward_btc(x_btc, params, stride, t_tile=None,
                          elementwise_dtype=None, out_dtype=jnp.float32):
    B, T, C = x_btc.shape
    conv_w = params["conv_w"]
    C2 = conv_w.shape[0]
    assert conv_w.shape == (C2, C, 2 * stride)

    cdt = (elementwise_dtype if elementwise_dtype is not None
           else _default_elementwise_dtype())

    if t_tile is None:
        t_tile = 512 if (T % 512 == 0 and T > 512) else T
    assert T % t_tile == 0 and t_tile % stride == 0
    assert t_tile == T or (t_tile % 16 == 0 and (t_tile // stride) % 16 == 0), (
        "t_tile and t_tile//stride must be multiples of 16 unless one tile "
        "covers the whole sequence")
    n_t = T // t_tile
    t_out = t_tile // stride

    dilations = (1, 3, 9)
    l_ctx = (2, 6, 18, 2 * stride - 1)    # causal left context per conv layer

    # Fold the 1x1 shortcut conv into the dilated conv's matmul (same LHS push,
    # wider MXU output) whenever 2C still fits one MXU output tile.
    fold_sc = C <= 128

    x_btc = x_btc.astype(jnp.bfloat16)

    # --- pack weights (taps folded into the contraction dim) ---
    rus = params["res_units"]
    w_in_l, b_in_l, w_out_l, b_out_l, w_sc_l, b_sc_l = [], [], [], [], [], []
    for ru in rus:
        w_in = jnp.transpose(ru["in_w"], (2, 1, 0)).reshape(3 * C, C)  # (3C, C)
        w_sc = ru["sc_w"][:, :, 0].T                                    # (C, C)
        if fold_sc:
            w_sc_pad = jnp.concatenate(
                [jnp.zeros((2 * C, C), jnp.float32), w_sc], axis=0)     # (3C, C)
            w_in_l.append(jnp.concatenate([w_in, w_sc_pad], axis=1))    # (3C, 2C)
            b_in_l.append(jnp.concatenate([ru["in_b"], ru["sc_b"]]).reshape(1, 2 * C))
        else:
            w_in_l.append(w_in)
            b_in_l.append(ru["in_b"].reshape(1, C))
        w_out_l.append(ru["out_w"][:, :, 0].T)
        b_out_l.append(ru["out_b"].reshape(1, C))
        w_sc_l.append(w_sc)
        b_sc_l.append(ru["sc_b"].reshape(1, C))

    w_in_s = jnp.stack(w_in_l).astype(jnp.bfloat16)
    b_in_s = jnp.stack(b_in_l).astype(cdt)
    w_out_s = jnp.stack(w_out_l).astype(jnp.bfloat16)
    b_out_s = jnp.stack(b_out_l).astype(cdt)
    w_sc_s = jnp.stack(w_sc_l).astype(jnp.bfloat16)
    b_sc_s = jnp.stack(b_sc_l).astype(cdt)
    w_ds = jnp.transpose(conv_w, (2, 1, 0)).reshape(2 * stride * C, C2)
    w_ds = w_ds.astype(jnp.bfloat16)                                    # (2s*C, C2)
    b_ds = params["conv_b"].reshape(1, C2)                              # f32

    if fold_sc:
        weights = [w_in_s, b_in_s, w_out_s, b_out_s, w_ds, b_ds]
    else:
        weights = [w_in_s, b_in_s, w_out_s, b_out_s, w_sc_s, b_sc_s, w_ds, b_ds]

    kernel = functools.partial(
        _enc_block_kernel, t_tile=t_tile, t_out=t_out, stride=stride,
        c_mid=C, dilations=dilations, l_ctx=l_ctx, fold_shortcut=fold_sc,
        cdt=cdt)

    def _full(shape):
        # Whole (small) array resident in VMEM; block index never changes so it
        # is DMA'd only once.
        return pl.BlockSpec(tuple(shape), lambda b, t: (0,) * len(shape))

    # --- VMEM budget from the actual (padded) footprint, plus slack ---
    out_isize = jnp.dtype(out_dtype).itemsize
    est = 2 * _padded_bytes((t_tile, C), 2)                 # x tile (double buffered)
    est += 2 * _padded_bytes((t_out, C2), out_isize)        # out tile
    for w in weights:
        est += 2 * _padded_bytes(w.shape, w.dtype.itemsize)
    for l in l_ctx:
        est += _padded_bytes((l + t_tile, C), 4)            # carry scratch (f32)
    vmem_limit = int(min(max(2 * est + (4 << 20), 32 << 20), 48 << 20))

    # --- cost estimate (helps XLA schedule around the custom call) ---
    n_w = 2 * C if fold_sc else C
    flops = B * T * 3 * (2 * 3 * C * n_w + 2 * C * C + (0 if fold_sc else 2 * C * C))
    flops += B * (T // stride) * 2 * (2 * stride * C) * C2
    bytes_accessed = (x_btc.size * 2
                      + B * (T // stride) * C2 * out_isize
                      + sum(int(w.size) * w.dtype.itemsize for w in weights))
    cost = pl.CostEstimate(flops=int(flops),
                           transcendentals=int(10 * B * T * C),
                           bytes_accessed=int(bytes_accessed))

    out_btc = pl.pallas_call(
        kernel,
        out_shape=jax.ShapeDtypeStruct((B, T // stride, C2), out_dtype),
        grid=(B, n_t),
        in_specs=[pl.BlockSpec((1, t_tile, C), lambda b, t: (b, t, 0))]
                 + [_full(w.shape) for w in weights],
        out_specs=pl.BlockSpec((1, t_out, C2), lambda b, t: (b, t, 0)),
        scratch_shapes=[pltpu.VMEM((l + t_tile, C), jnp.float32) for l in l_ctx],
        compiler_params=pltpu.CompilerParams(
            dimension_semantics=("parallel", "arbitrary"),
            vmem_limit_bytes=vmem_limit),
        cost_estimate=cost,
    )(x_btc, *weights)
    return out_btc


def enc_block_forward(x_bct, params, stride, **kwargs):
    """PyTorch-layout wrapper: x (B, C_in, T) -> (B, 2*C_in, T // stride)."""
    x_btc = jnp.transpose(x_bct, (0, 2, 1))
    out_btc = enc_block_forward_btc(x_btc, params, stride, **kwargs)
    return jnp.transpose(out_btc, (0, 2, 1))


# ---------------------------------------------------------------------------
# Pure-JAX reference (in-script verification).  Mimics the strict-mode kernel
# numerics: conv operands rounded to bf16, accumulation / bias / ELU in f32.
# ---------------------------------------------------------------------------
def _qbf16(v):
    return v.astype(jnp.bfloat16).astype(jnp.float32)


def ref_forward(x_bct, params, stride):
    prec = jax.lax.Precision.HIGHEST

    def conv(x, w, b, dil=1, stride_=1):
        y = jax.lax.conv_general_dilated(
            _qbf16(x), _qbf16(w), window_strides=(stride_,), padding="VALID",
            rhs_dilation=(dil,), dimension_numbers=("NCH", "OIH", "NCH"),
            precision=prec)
        return y + b[None, :, None]

    def causal(x, w, b, dil):
        K = w.shape[2]
        xp = jnp.pad(x, ((0, 0), (0, 0), ((K - 1) * dil, 0)))
        return _elu(conv(xp, w, b, dil))

    x = x_bct
    for ru in params["res_units"]:
        y = causal(x, ru["in_w"], ru["in_b"], ru["dilation"])
        y = causal(y, ru["out_w"], ru["out_b"], 1)
        xs = causal(x, ru["sc_w"], ru["sc_b"], 1)
        x = xs + y
    x = _elu(x)
    xp = jnp.pad(x, ((0, 0), (0, 0), (2 * stride - 1, 0)))
    return conv(xp, params["conv_w"], params["conv_b"], dil=1, stride_=stride)


# ---------------------------------------------------------------------------
# Deterministic parameter init (PyTorch Conv1d-style uniform; weight_norm is
# identity at init, so the effective weights are used directly).
# ---------------------------------------------------------------------------
def init_conv(key, c_out, c_in, k):
    k1, k2 = jax.random.split(key)
    bound = 1.0 / (c_in * k) ** 0.5
    w = jax.random.uniform(k1, (c_out, c_in, k), jnp.float32, -bound, bound)
    b = jax.random.uniform(k2, (c_out,), jnp.float32, -bound, bound)
    return w, b


def init_enc_block_params(key, out_channels, stride):
    c = out_channels // 2
    keys = jax.random.split(key, 10)
    res_units = []
    for i, dil in enumerate((1, 3, 9)):
        kin, kout, ksc = jax.random.split(keys[i], 3)
        in_w, in_b = init_conv(kin, c, c, 3)
        out_w, out_b = init_conv(kout, c, c, 1)
        sc_w, sc_b = init_conv(ksc, c, c, 1)
        res_units.append(dict(dilation=dil, in_w=in_w, in_b=in_b,
                              out_w=out_w, out_b=out_b, sc_w=sc_w, sc_b=sc_b))
    conv_w, conv_b = init_conv(keys[3], out_channels, c, 2 * stride)
    return dict(res_units=res_units, conv_w=conv_w, conv_b=conv_b)


if __name__ == "__main__":
    out_channels, stride = 8, 2
    B, T = 2, 64                       # two T-tiles of 32 -> exercises the carries
    C_in = out_channels // 2

    root = jax.random.PRNGKey(0)
    pkey, xkey = jax.random.split(root)
    params = init_enc_block_params(pkey, out_channels, stride)
    x = jax.random.normal(xkey, (B, C_in, T), jnp.float32)   # PyTorch NCW layout

    # 1) Strict-numerics run (f32 element-wise, f32 output): tight check vs ref.
    fwd_strict = jax.jit(functools.partial(
        enc_block_forward, params=params, stride=stride, t_tile=32,
        elementwise_dtype=jnp.float32, out_dtype=jnp.float32))
    out_strict = jax.block_until_ready(fwd_strict(x))
    assert out_strict.shape == (B, out_channels, T // stride), out_strict.shape

    ref = jax.block_until_ready(ref_forward(x, params, stride))
    max_err = float(jnp.max(jnp.abs(out_strict - ref)))
    assert max_err < 5e-3, f"mismatch vs reference: {max_err}"

    # 2) Fast-path run (bf16 element-wise on v6e/v7x, bf16 output): loose check.
    fwd_fast = jax.jit(functools.partial(
        enc_block_forward, params=params, stride=stride, t_tile=32,
        out_dtype=jnp.bfloat16))
    out_fast = jax.block_until_ready(fwd_fast(x)).astype(jnp.float32)
    rel_err = float(jnp.max(jnp.abs(out_fast - out_strict)
                            / (1.0 + jnp.abs(out_strict))))
    assert rel_err < 0.1, f"fast path diverged from strict path: {rel_err}"

    print("KERNEL_OK")
</pallas_src>

<mosaic_0001>
module attributes {stable_mosaic.version = 11 : i64} {
  func.func @_enc_block_kernel(%arg0: i32, %arg1: i32, %arg2: memref<1x32x4xbf16, #tpu.memory_space<vmem>>, %arg3: memref<3x12x8xbf16, #tpu.memory_space<vmem>>, %arg4: memref<3x1x8xf32, #tpu.memory_space<vmem>>, %arg5: memref<3x4x4xbf16, #tpu.memory_space<vmem>>, %arg6: memref<3x1x4xf32, #tpu.memory_space<vmem>>, %arg7: memref<16x8xbf16, #tpu.memory_space<vmem>>, %arg8: memref<1x8xf32, #tpu.memory_space<vmem>>, %arg9: memref<1x16x8xf32, #tpu.memory_space<vmem>>, %arg10: memref<34x4xf32, #tpu.memory_space<vmem>>, %arg11: memref<38x4xf32, #tpu.memory_space<vmem>>, %arg12: memref<50x4xf32, #tpu.memory_space<vmem>>, %arg13: memref<35x4xf32, #tpu.memory_space<vmem>>) attributes {dimension_semantics = [#tpu.dimension_semantics<parallel>, #tpu.dimension_semantics<arbitrary>], iteration_bounds = array<i64: 2, 2>, scalar_prefetch = 0 : i64, scratch_operands = 4 : i64, tpu.core_type = #tpu.core_type<tc>, window_params = [{transform_indices = @transform_0, window_bounds = array<i64: 1, 32, 4>}, {pipeline_mode = #tpu.pipeline_mode<synchronous>, transform_indices = @transform_1, window_bounds = array<i64: 3, 12, 8>}, {pipeline_mode = #tpu.pipeline_mode<synchronous>, transform_indices = @transform_2, window_bounds = array<i64: 3, 1, 8>}, {pipeline_mode = #tpu.pipeline_mode<synchronous>, transform_indices = @transform_3, window_bounds = array<i64: 3, 4, 4>}, {pipeline_mode = #tpu.pipeline_mode<synchronous>, transform_indices = @transform_4, window_bounds = array<i64: 3, 1, 4>}, {pipeline_mode = #tpu.pipeline_mode<synchronous>, transform_indices = @transform_5, window_bounds = array<i64: 16, 8>}, {pipeline_mode = #tpu.pipeline_mode<synchronous>, transform_indices = @transform_6, window_bounds = array<i64: 1, 8>}, {transform_indices = @transform_7, window_bounds = array<i64: 1, 16, 8>}]} {
    %c0_i32 = arith.constant 0 : i32
    %0 = arith.cmpi eq, %arg1, %c0_i32 : i32
    %1 = arith.extui %0 : i1 to i32
    %c0_i32_0 = arith.constant 0 : i32
    %2 = arith.cmpi ne, %1, %c0_i32_0 : i32
    scf.if %2 {
      %cst_109 = arith.constant 0.000000e+00 : f32
      %143 = vector.broadcast %cst_109 : f32 to vector<2x4xf32>
      %c0_110 = arith.constant 0 : index
      %c0_111 = arith.constant 0 : index
      %144 = vector.load %arg10[%c0_110, %c0_111] : memref<34x4xf32, #tpu.memory_space<vmem>>, vector<2x4xf32>
      tpu.vector_store %arg10[%c0_110, %c0_111], %143 {strides = array<i32>} : memref<34x4xf32, #tpu.memory_space<vmem>>, vector<2x4xf32>,
      %cst_112 = arith.constant 0.000000e+00 : f32
      %145 = vector.broadcast %cst_112 : f32 to vector<6x4xf32>
      %c0_113 = arith.constant 0 : index
      %c0_114 = arith.constant 0 : index
      %146 = vector.load %arg11[%c0_113, %c0_114] : memref<38x4xf32, #tpu.memory_space<vmem>>, vector<6x4xf32>
      tpu.vector_store %arg11[%c0_113, %c0_114], %145 {strides = array<i32>} : memref<38x4xf32, #tpu.memory_space<vmem>>, vector<6x4xf32>,
      %cst_115 = arith.constant 0.000000e+00 : f32
      %147 = vector.broadcast %cst_115 : f32 to vector<18x4xf32>
      %c0_116 = arith.constant 0 : index
      %c0_117 = arith.constant 0 : index
      %148 = vector.load %arg12[%c0_116, %c0_117] : memref<50x4xf32, #tpu.memory_space<vmem>>, vector<18x4xf32>
      tpu.vector_store %arg12[%c0_116, %c0_117], %147 {strides = array<i32>} : memref<50x4xf32, #tpu.memory_space<vmem>>, vector<18x4xf32>,
      %cst_118 = arith.constant 0.000000e+00 : f32
      %149 = vector.broadcast %cst_118 : f32 to vector<3x4xf32>
      %c0_119 = arith.constant 0 : index
      %c0_120 = arith.constant 0 : index
      %150 = vector.load %arg13[%c0_119, %c0_120] : memref<35x4xf32, #tpu.memory_space<vmem>>, vector<3x4xf32>
      tpu.vector_store %arg13[%c0_119, %c0_120], %149 {strides = array<i32>} : memref<35x4xf32, #tpu.memory_space<vmem>>, vector<3x4xf32>,
    } else {
    }
    %c0 = arith.constant 0 : index
    %c0_1 = arith.constant 0 : index
    %c0_2 = arith.constant 0 : index
    %3 = vector.load %arg2[%c0, %c0_1, %c0_2] : memref<1x32x4xbf16, #tpu.memory_space<vmem>>, vector<1x32x4xbf16>
    %4 = vector.shape_cast %3 : vector<1x32x4xbf16> to vector<32x4xbf16>
    %5 = arith.extf %4 : vector<32x4xbf16> to vector<32x4xf32>
    %c2 = arith.constant 2 : index
    %c0_3 = arith.constant 0 : index
    %6 = vector.load %arg10[%c2, %c0_3] : memref<34x4xf32, #tpu.memory_space<vmem>>, vector<32x4xf32>
    tpu.vector_store %arg10[%c2, %c0_3], %5 {strides = array<i32>} : memref<34x4xf32, #tpu.memory_space<vmem>>, vector<32x4xf32>,
    %c0_4 = arith.constant 0 : index
    %c0_5 = arith.constant 0 : index
    %7 = vector.load %arg10[%c0_4, %c0_5] : memref<34x4xf32, #tpu.memory_space<vmem>>, vector<32x4xf32>
    %c1 = arith.constant 1 : index
    %c0_6 = arith.constant 0 : index
    %8 = vector.load %arg10[%c1, %c0_6] : memref<34x4xf32, #tpu.memory_space<vmem>>, vector<32x4xf32>
    %c2_7 = arith.constant 2 : index
    %c0_8 = arith.constant 0 : index
    %9 = vector.load %arg10[%c2_7, %c0_8] : memref<34x4xf32, #tpu.memory_space<vmem>>, vector<32x4xf32>
    %10 = tpu.concatenate %7, %8, %9 in 1 : vector<32x4xf32>, vector<32x4xf32>, vector<32x4xf32> -> vector<32x12xf32>
    %11 = arith.truncf %10 : vector<32x12xf32> to vector<32x12xbf16>
    %c0_9 = arith.constant 0 : index
    %c0_10 = arith.constant 0 : index
    %c0_11 = arith.constant 0 : index
    %12 = vector.load %arg3[%c0_9, %c0_10, %c0_11] : memref<3x12x8xbf16, #tpu.memory_space<vmem>>, vector<1x12x8xbf16>
    %13 = vector.shape_cast %12 : vector<1x12x8xbf16> to vector<12x8xbf16>
    %cst = arith.constant dense<0.000000e+00> : vector<32x8xf32>
    %14 = tpu.matmul %11, %13, %cst {dimension_numbers = #tpu.dot_dimension_numbers<[1], [0], [0], [1], [0, 0, 1, 1], [], []>} : vector<32x12xbf16>, vector<12x8xbf16>, vector<32x8xf32> -> vector<32x8xf32>
    %c0_12 = arith.constant 0 : index
    %c0_13 = arith.constant 0 : index
    %c0_14 = arith.constant 0 : index
    %15 = vector.load %arg4[%c0_12, %c0_13, %c0_14] : memref<3x1x8xf32, #tpu.memory_space<vmem>>, vector<1x1x8xf32>
    %16 = vector.shape_cast %15 : vector<1x1x8xf32> to vector<1x8xf32>
    %17 = vector.broadcast %16 : vector<1x8xf32> to vector<32x8xf32>
    %18 = arith.addf %14, %17 : vector<32x8xf32>
    %cst_15 = arith.constant 0.000000e+00 : f32
    %19 = vector.broadcast %cst_15 : f32 to vector<32x8xf32>
    %20 = arith.cmpf ogt, %18, %19 : vector<32x8xf32>
    %21 = math.exp %18 : vector<32x8xf32>
    %cst_16 = arith.constant 1.000000e+00 : f32
    %22 = vector.broadcast %cst_16 : f32 to vector<32x8xf32>
    %23 = arith.subf %21, %22 : vector<32x8xf32>
    %24 = arith.select %20, %18, %23 : vector<32x8xi1>, vector<32x8xf32>
    %25 = vector.extract_strided_slice %24 {offsets = [0, 0], sizes = [32, 4], strides = [1, 1]} : vector<32x8xf32> to vector<32x4xf32>
    %26 = vector.extract_strided_slice %24 {offsets = [0, 4], sizes = [32, 4], strides = [1, 1]} : vector<32x8xf32> to vector<32x4xf32>
    %27 = arith.truncf %25 : vector<32x4xf32> to vector<32x4xbf16>
    %c0_17 = arith.constant 0 : index
    %c0_18 = arith.constant 0 : index
    %c0_19 = arith.constant 0 : index
    %28 = vector.load %arg5[%c0_17, %c0_18, %c0_19] : memref<3x4x4xbf16, #tpu.memory_space<vmem>>, vector<1x4x4xbf16>
    %29 = vector.shape_cast %28 : vector<1x4x4xbf16> to vector<4x4xbf16>
    %cst_20 = arith.constant dense<0.000000e+00> : vector<32x4xf32>
    %30 = tpu.matmul %27, %29, %cst_20 {dimension_numbers = #tpu.dot_dimension_numbers<[1], [0], [0], [1], [0, 0, 1, 1], [], []>} : vector<32x4xbf16>, vector<4x4xbf16>, vector<32x4xf32> -> vector<32x4xf32>
    %c0_21 = arith.constant 0 : index
    %c0_22 = arith.constant 0 : index
    %c0_23 = arith.constant 0 : index
    %31 = vector.load %arg6[%c0_21, %c0_22, %c0_23] : memref<3x1x4xf32, #tpu.memory_space<vmem>>, vector<1x1x4xf32>
    %32 = vector.shape_cast %31 : vector<1x1x4xf32> to vector<1x4xf32>
    %33 = vector.broadcast %32 : vector<1x4xf32> to vector<32x4xf32>
    %34 = arith.addf %30, %33 : vector<32x4xf32>
    %cst_24 = arith.constant 0.000000e+00 : f32
    %35 = vector.broadcast %cst_24 : f32 to vector<32x4xf32>
    %36 = arith.cmpf ogt, %34, %35 : vector<32x4xf32>
    %37 = math.exp %34 : vector<32x4xf32>
    %cst_25 = arith.constant 1.000000e+00 : f32
    %38 = vector.broadcast %cst_25 : f32 to vector<32x4xf32>
    %39 = arith.subf %37, %38 : vector<32x4xf32>
    %40 = arith.select %36, %34, %39 : vector<32x4xi1>, vector<32x4xf32>
    %41 = arith.addf %26, %40 : vector<32x4xf32>
    %c32 = arith.constant 32 : index
    %c0_26 = arith.constant 0 : index
    %42 = vector.load %arg10[%c32, %c0_26] : memref<34x4xf32, #tpu.memory_space<vmem>>, vector<2x4xf32>
    %c0_27 = arith.constant 0 : index
    %c0_28 = arith.constant 0 : index
    %43 = vector.load %arg10[%c0_27, %c0_28] : memref<34x4xf32, #tpu.memory_space<vmem>>, vector<2x4xf32>
    tpu.vector_store %arg10[%c0_27, %c0_28], %42 {strides = array<i32>} : memref<34x4xf32, #tpu.memory_space<vmem>>, vector<2x4xf32>,
    %c6 = arith.constant 6 : index
    %c0_29 = arith.constant 0 : index
    %44 = vector.load %arg11[%c6, %c0_29] : memref<38x4xf32, #tpu.memory_space<vmem>>, vector<32x4xf32>
    tpu.vector_store %arg11[%c6, %c0_29], %41 {strides = array<i32>} : memref<38x4xf32, #tpu.memory_space<vmem>>, vector<32x4xf32>,
    %c0_30 = arith.constant 0 : index
    %c0_31 = arith.constant 0 : index
    %45 = vector.load %arg11[%c0_30, %c0_31] : memref<38x4xf32, #tpu.memory_space<vmem>>, vector<32x4xf32>
    %c3 = arith.constant 3 : index
    %c0_32 = arith.constant 0 : index
    %46 = vector.load %arg11[%c3, %c0_32] : memref<38x4xf32, #tpu.memory_space<vmem>>, vector<32x4xf32>
    %c6_33 = arith.constant 6 : index
    %c0_34 = arith.constant 0 : index
    %47 = vector.load %arg11[%c6_33, %c0_34] : memref<38x4xf32, #tpu.memory_space<vmem>>, vector<32x4xf32>
    %48 = tpu.concatenate %45, %46, %47 in 1 : vector<32x4xf32>, vector<32x4xf32>, vector<32x4xf32> -> vector<32x12xf32>
    %49 = arith.truncf %48 : vector<32x12xf32> to vector<32x12xbf16>
    %c1_35 = arith.constant 1 : index
    %c0_36 = arith.constant 0 : index
    %c0_37 = arith.constant 0 : index
    %50 = vector.load %arg3[%c1_35, %c0_36, %c0_37] : memref<3x12x8xbf16, #tpu.memory_space<vmem>>, vector<1x12x8xbf16>
    %51 = vector.shape_cast %50 : vector<1x12x8xbf16> to vector<12x8xbf16>
    %cst_38 = arith.constant dense<0.000000e+00> : vector<32x8xf32>
    %52 = tpu.matmul %49, %51, %cst_38 {dimension_numbers = #tpu.dot_dimension_numbers<[1], [0], [0], [1], [0, 0, 1, 1], [], []>} : vector<32x12xbf16>, vector<12x8xbf16>, vector<32x8xf32> -> vector<32x8xf32>
    %c1_39 = arith.constant 1 : index
    %c0_40 = arith.constant 0 : index
    %c0_41 = arith.constant 0 : index
    %53 = vector.load %arg4[%c1_39, %c0_40, %c0_41] : memref<3x1x8xf32, #tpu.memory_space<vmem>>, vector<1x1x8xf32>
    %54 = vector.shape_cast %53 : vector<1x1x8xf32> to vector<1x8xf32>
    %55 = vector.broadcast %54 : vector<1x8xf32> to vector<32x8xf32>
    %56 = arith.addf %52, %55 : vector<32x8xf32>
    %cst_42 = arith.constant 0.000000e+00 : f32
    %57 = vector.broadcast %cst_42 : f32 to vector<32x8xf32>
    %58 = arith.cmpf ogt, %56, %57 : vector<32x8xf32>
    %59 = math.exp %56 : vector<32x8xf32>
    %cst_43 = arith.constant 1.000000e+00 : f32
    %60 = vector.broadcast %cst_43 : f32 to vector<32x8xf32>
    %61 = arith.subf %59, %60 : vector<32x8xf32>
    %62 = arith.select %58, %56, %61 : vector<32x8xi1>, vector<32x8xf32>
    %63 = vector.extract_strided_slice %62 {offsets = [0, 0], sizes = [32, 4], strides = [1, 1]} : vector<32x8xf32> to vector<32x4xf32>
    %64 = vector.extract_strided_slice %62 {offsets = [0, 4], sizes = [32, 4], strides = [1, 1]} : vector<32x8xf32> to vector<32x4xf32>
    %65 = arith.truncf %63 : vector<32x4xf32> to vector<32x4xbf16>
    %c1_44 = arith.constant 1 : index
    %c0_45 = arith.constant 0 : index
    %c0_46 = arith.constant 0 : index
    %66 = vector.load %arg5[%c1_44, %c0_45, %c0_46] : memref<3x4x4xbf16, #tpu.memory_space<vmem>>, vector<1x4x4xbf16>
    %67 = vector.shape_cast %66 : vector<1x4x4xbf16> to vector<4x4xbf16>
    %cst_47 = arith.constant dense<0.000000e+00> : vector<32x4xf32>
    %68 = tpu.matmul %65, %67, %cst_47 {dimension_numbers = #tpu.dot_dimension_numbers<[1], [0], [0], [1], [0, 0, 1, 1], [], []>} : vector<32x4xbf16>, vector<4x4xbf16>, vector<32x4xf32> -> vector<32x4xf32>
    %c1_48 = arith.constant 1 : index
    %c0_49 = arith.constant 0 : index
    %c0_50 = arith.constant 0 : index
    %69 = vector.load %arg6[%c1_48, %c0_49, %c0_50] : memref<3x1x4xf32, #tpu.memory_space<vmem>>, vector<1x1x4xf32>
    %70 = vector.shape_cast %69 : vector<1x1x4xf32> to vector<1x4xf32>
    %71 = vector.broadcast %70 : vector<1x4xf32> to vector<32x4xf32>
    %72 = arith.addf %68, %71 : vector<32x4xf32>
    %cst_51 = arith.constant 0.000000e+00 : f32
    %73 = vector.broadcast %cst_51 : f32 to vector<32x4xf32>
    %74 = arith.cmpf ogt, %72, %73 : vector<32x4xf32>
    %75 = math.exp %72 : vector<32x4xf32>
    %cst_52 = arith.constant 1.000000e+00 : f32
    %76 = vector.broadcast %cst_52 : f32 to vector<32x4xf32>
    %77 = arith.subf %75, %76 : vector<32x4xf32>
    %78 = arith.select %74, %72, %77 : vector<32x4xi1>, vector<32x4xf32>
    %79 = arith.addf %64, %78 : vector<32x4xf32>
    %c32_53 = arith.constant 32 : index
    %c0_54 = arith.constant 0 : index
    %80 = vector.load %arg11[%c32_53, %c0_54] : memref<38x4xf32, #tpu.memory_space<vmem>>, vector<6x4xf32>
    %c0_55 = arith.constant 0 : index
    %c0_56 = arith.constant 0 : index
    %81 = vector.load %arg11[%c0_55, %c0_56] : memref<38x4xf32, #tpu.memory_space<vmem>>, vector<6x4xf32>
    tpu.vector_store %arg11[%c0_55, %c0_56], %80 {strides = array<i32>} : memref<38x4xf32, #tpu.memory_space<vmem>>, vector<6x4xf32>,
    %c18 = arith.constant 18 : index
    %c0_57 = arith.constant 0 : index
    %82 = vector.load %arg12[%c18, %c0_57] : memref<50x4xf32, #tpu.memory_space<vmem>>, vector<32x4xf32>
    tpu.vector_store %arg12[%c18, %c0_57], %79 {strides = array<i32>} : memref<50x4xf32, #tpu.memory_space<vmem>>, vector<32x4xf32>,
    %c0_58 = arith.constant 0 : index
    %c0_59 = arith.constant 0 : index
    %83 = vector.load %arg12[%c0_58, %c0_59] : memref<50x4xf32, #tpu.memory_space<vmem>>, vector<32x4xf32>
    %c9 = arith.constant 9 : index
    %c0_60 = arith.constant 0 : index
    %84 = vector.load %arg12[%c9, %c0_60] : memref<50x4xf32, #tpu.memory_space<vmem>>, vector<32x4xf32>
    %c18_61 = arith.constant 18 : index
    %c0_62 = arith.constant 0 : index
    %85 = vector.load %arg12[%c18_61, %c0_62] : memref<50x4xf32, #tpu.memory_space<vmem>>, vector<32x4xf32>
    %86 = tpu.concatenate %83, %84, %85 in 1 : vector<32x4xf32>, vector<32x4xf32>, vector<32x4xf32> -> vector<32x12xf32>
    %87 = arith.truncf %86 : vector<32x12xf32> to vector<32x12xbf16>
    %c2_63 = arith.constant 2 : index
    %c0_64 = arith.constant 0 : index
    %c0_65 = arith.constant 0 : index
    %88 = vector.load %arg3[%c2_63, %c0_64, %c0_65] : memref<3x12x8xbf16, #tpu.memory_space<vmem>>, vector<1x12x8xbf16>
    %89 = vector.shape_cast %88 : vector<1x12x8xbf16> to vector<12x8xbf16>
    %cst_66 = arith.constant dense<0.000000e+00> : vector<32x8xf32>
    %90 = tpu.matmul %87, %89, %cst_66 {dimension_numbers = #tpu.dot_dimension_numbers<[1], [0], [0], [1], [0, 0, 1, 1], [], []>} : vector<32x12xbf16>, vector<12x8xbf16>, vector<32x8xf32> -> vector<32x8xf32>
    %c2_67 = arith.constant 2 : index
    %c0_68 = arith.constant 0 : index
    %c0_69 = arith.constant 0 : index
    %91 = vector.load %arg4[%c2_67, %c0_68, %c0_69] : memref<3x1x8xf32, #tpu.memory_space<vmem>>, vector<1x1x8xf32>
    %92 = vector.shape_cast %91 : vector<1x1x8xf32> to vector<1x8xf32>
    %93 = vector.broadcast %92 : vector<1x8xf32> to vector<32x8xf32>
    %94 = arith.addf %90, %93 : vector<32x8xf32>
    %cst_70 = arith.constant 0.000000e+00 : f32
    %95 = vector.broadcast %cst_70 : f32 to vector<32x8xf32>
    %96 = arith.cmpf ogt, %94, %95 : vector<32x8xf32>
    %97 = math.exp %94 : vector<32x8xf32>
    %cst_71 = arith.constant 1.000000e+00 : f32
    %98 = vector.broadcast %cst_71 : f32 to vector<32x8xf32>
    %99 = arith.subf %97, %98 : vector<32x8xf32>
    %100 = arith.select %96, %94, %99 : vector<32x8xi1>, vector<32x8xf32>
    %101 = vector.extract_strided_slice %100 {offsets = [0, 0], sizes = [32, 4], strides = [1, 1]} : vector<32x8xf32> to vector<32x4xf32>
    %102 = vector.extract_strided_slice %100 {offsets = [0, 4], sizes = [32, 4], strides = [1, 1]} : vector<32x8xf32> to vector<32x4xf32>
    %103 = arith.truncf %101 : vector<32x4xf32> to vector<32x4xbf16>
    %c2_72 = arith.constant 2 : index
    %c0_73 = arith.constant 0 : index
    %c0_74 = arith.constant 0 : index
    %104 = vector.load %arg5[%c2_72, %c0_73, %c0_74] : memref<3x4x4xbf16, #tpu.memory_space<vmem>>, vector<1x4x4xbf16>
    %105 = vector.shape_cast %104 : vector<1x4x4xbf16> to vector<4x4xbf16>
    %cst_75 = arith.constant dense<0.000000e+00> : vector<32x4xf32>
    %106 = tpu.matmul %103, %105, %cst_75 {dimension_numbers = #tpu.dot_dimension_numbers<[1], [0], [0], [1], [0, 0, 1, 1], [], []>} : vector<32x4xbf16>, vector<4x4xbf16>, vector<32x4xf32> -> vector<32x4xf32>
    %c2_76 = arith.constant 2 : index
    %c0_77 = arith.constant 0 : index
    %c0_78 = arith.constant 0 : index
    %107 = vector.load %arg6[%c2_76, %c0_77, %c0_78] : memref<3x1x4xf32, #tpu.memory_space<vmem>>, vector<1x1x4xf32>
    %108 = vector.shape_cast %107 : vector<1x1x4xf32> to vector<1x4xf32>
    %109 = vector.broadcast %108 : vector<1x4xf32> to vector<32x4xf32>
    %110 = arith.addf %106, %109 : vector<32x4xf32>
    %cst_79 = arith.constant 0.000000e+00 : f32
    %111 = vector.broadcast %cst_79 : f32 to vector<32x4xf32>
    %112 = arith.cmpf ogt, %110, %111 : vector<32x4xf32>
    %113 = math.exp %110 : vector<32x4xf32>
    %cst_80 = arith.constant 1.000000e+00 : f32
    %114 = vector.broadcast %cst_80 : f32 to vector<32x4xf32>
    %115 = arith.subf %113, %114 : vector<32x4xf32>
    %116 = arith.select %112, %110, %115 : vector<32x4xi1>, vector<32x4xf32>
    %117 = arith.addf %102, %116 : vector<32x4xf32>
    %c32_81 = arith.constant 32 : index
    %c0_82 = arith.constant 0 : index
    %118 = vector.load %arg12[%c32_81, %c0_82] : memref<50x4xf32, #tpu.memory_space<vmem>>, vector<18x4xf32>
    %c0_83 = arith.constant 0 : index
    %c0_84 = arith.constant 0 : index
    %119 = vector.load %arg12[%c0_83, %c0_84] : memref<50x4xf32, #tpu.memory_space<vmem>>, vector<18x4xf32>
    tpu.vector_store %arg12[%c0_83, %c0_84], %118 {strides = array<i32>} : memref<50x4xf32, #tpu.memory_space<vmem>>, vector<18x4xf32>,
    %cst_85 = arith.constant 0.000000e+00 : f32
    %120 = vector.broadcast %cst_85 : f32 to vector<32x4xf32>
    %121 = arith.cmpf ogt, %117, %120 : vector<32x4xf32>
    %122 = math.exp %117 : vector<32x4xf32>
    %cst_86 = arith.constant 1.000000e+00 : f32
    %123 = vector.broadcast %cst_86 : f32 to vector<32x4xf32>
    %124 = arith.subf %122, %123 : vector<32x4xf32>
    %125 = arith.select %121, %117, %124 : vector<32x4xi1>, vector<32x4xf32>
    %c3_87 = arith.constant 3 : index
    %c0_88 = arith.constant 0 : index
    %126 = vector.load %arg13[%c3_87, %c0_88] : memref<35x4xf32, #tpu.memory_space<vmem>>, vector<32x4xf32>
    tpu.vector_store %arg13[%c3_87, %c0_88], %125 {strides = array<i32>} : memref<35x4xf32, #tpu.memory_space<vmem>>, vector<32x4xf32>,
    %c0_89 = arith.constant 0 : index
    %c0_90 = arith.constant 0 : index
    %127 = tpu.strided_load %arg13[%c0_89, %c0_90] {strides = array<i32: 2, 1>} : memref<35x4xf32, #tpu.memory_space<vmem>>, vector<16x4xf32>
    %c1_91 = arith.constant 1 : index
    %c0_92 = arith.constant 0 : index
    %128 = tpu.strided_load %arg13[%c1_91, %c0_92] {strides = array<i32: 2, 1>} : memref<35x4xf32, #tpu.memory_space<vmem>>, vector<16x4xf32>
    %c2_93 = arith.constant 2 : index
    %c0_94 = arith.constant 0 : index
    %129 = tpu.strided_load %arg13[%c2_93, %c0_94] {strides = array<i32: 2, 1>} : memref<35x4xf32, #tpu.memory_space<vmem>>, vector<16x4xf32>
    %c3_95 = arith.constant 3 : index
    %c0_96 = arith.constant 0 : index
    %130 = tpu.strided_load %arg13[%c3_95, %c0_96] {strides = array<i32: 2, 1>} : memref<35x4xf32, #tpu.memory_space<vmem>>, vector<16x4xf32>
    %131 = tpu.concatenate %127, %128, %129, %130 in 1 : vector<16x4xf32>, vector<16x4xf32>, vector<16x4xf32>, vector<16x4xf32> -> vector<16x16xf32>
    %132 = arith.truncf %131 : vector<16x16xf32> to vector<16x16xbf16>
    %c0_97 = arith.constant 0 : index
    %c0_98 = arith.constant 0 : index
    %133 = vector.load %arg7[%c0_97, %c0_98] : memref<16x8xbf16, #tpu.memory_space<vmem>>, vector<16x8xbf16>
    %cst_99 = arith.constant dense<0.000000e+00> : vector<16x8xf32>
    %134 = tpu.matmul %132, %133, %cst_99 {dimension_numbers = #tpu.dot_dimension_numbers<[1], [0], [0], [1], [0, 0, 1, 1], [], []>} : vector<16x16xbf16>, vector<16x8xbf16>, vector<16x8xf32> -> vector<16x8xf32>
    %c0_100 = arith.constant 0 : index
    %c0_101 = arith.constant 0 : index
    %135 = vector.load %arg8[%c0_100, %c0_101] : memref<1x8xf32, #tpu.memory_space<vmem>>, vector<1x8xf32>
    %136 = vector.broadcast %135 : vector<1x8xf32> to vector<16x8xf32>
    %137 = arith.addf %134, %136 : vector<16x8xf32>
    %c0_102 = arith.constant 0 : index
    %c0_103 = arith.constant 0 : index
    %c0_104 = arith.constant 0 : index
    %138 = vector.load %arg9[%c0_102, %c0_103, %c0_104] : memref<1x16x8xf32, #tpu.memory_space<vmem>>, vector<1x16x8xf32>
    %139 = vector.shape_cast %138 : vector<1x16x8xf32> to vector<16x8xf32>
    %140 = vector.shape_cast %137 : vector<16x8xf32> to vector<1x16x8xf32>
    tpu.vector_store %arg9[%c0_102, %c0_103, %c0_104], %140 {strides = array<i32>} : memref<1x16x8xf32, #tpu.memory_space<vmem>>, vector<1x16x8xf32>,
    %c32_105 = arith.constant 32 : index
    %c0_106 = arith.constant 0 : index
    %141 = vector.load %arg13[%c32_105, %c0_106] : memref<35x4xf32, #tpu.memory_space<vmem>>, vector<3x4xf32>
    %c0_107 = arith.constant 0 : index
    %c0_108 = arith.constant 0 : index
    %142 = vector.load %arg13[%c0_107, %c0_108] : memref<35x4xf32, #tpu.memory_space<vmem>>, vector<3x4xf32>
    tpu.vector_store %arg13[%c0_107, %c0_108], %141 {strides = array<i32>} : memref<35x4xf32, #tpu.memory_space<vmem>>, vector<3x4xf32>,
    return
  }
  func.func @transform_0(%arg0: i32, %arg1: i32) -> (i32, i32, i32) {
    %c0_i32 = arith.constant 0 : i32
    %c0_i32_0 = arith.constant 0 : i32
    return %arg0, %arg1, %c0_i32 : i32, i32, i32
  }
  func.func @transform_1(%arg0: i32, %arg1: i32) -> (i32, i32, i32) {
    %c0_i32 = arith.constant 0 : i32
    %c0_i32_0 = arith.constant 0 : i32
    %c0_i32_1 = arith.constant 0 : i32
    %c0_i32_2 = arith.constant 0 : i32
    return %c0_i32, %c0_i32_0, %c0_i32_1 : i32, i32, i32
  }
  func.func @transform_2(%arg0: i32, %arg1: i32) -> (i32, i32, i32) {
    %c0_i32 = arith.constant 0 : i32
    %c0_i32_0 = arith.constant 0 : i32
    %c0_i32_1 = arith.constant 0 : i32
    %c0_i32_2 = arith.constant 0 : i32
    return %c0_i32, %c0_i32_0, %c0_i32_1 : i32, i32, i32
  }
  func.func @transform_3(%arg0: i32, %arg1: i32) -> (i32, i32, i32) {
    %c0_i32 = arith.constant 0 : i32
    %c0_i32_0 = arith.constant 0 : i32
    %c0_i32_1 = arith.constant 0 : i32
    %c0_i32_2 = arith.constant 0 : i32
    return %c0_i32, %c0_i32_0, %c0_i32_1 : i32, i32, i32
  }
  func.func @transform_4(%arg0: i32, %arg1: i32) -> (i32, i32, i32) {
    %c0_i32 = arith.constant 0 : i32
    %c0_i32_0 = arith.constant 0 : i32
    %c0_i32_1 = arith.constant 0 : i32
    %c0_i32_2 = arith.constant 0 : i32
    return %c0_i32, %c0_i32_0, %c0_i32_1 : i32, i32, i32
  }
  func.func @transform_5(%arg0: i32, %arg1: i32) -> (i32, i32) {
    %c0_i32 = arith.constant 0 : i32
    %c0_i32_0 = arith.constant 0 : i32
    %c0_i32_1 = arith.constant 0 : i32
    return %c0_i32, %c0_i32_0 : i32, i32
  }
  func.func @transform_6(%arg0: i32, %arg1: i32) -> (i32, i32) {
    %c0_i32 = arith.constant 0 : i32
    %c0_i32_0 = arith.constant 0 : i32
    %c0_i32_1 = arith.constant 0 : i32
    return %c0_i32, %c0_i32_0 : i32, i32
  }
  func.func @transform_7(%arg0: i32, %arg1: i32) -> (i32, i32, i32) {
    %c0_i32 = arith.constant 0 : i32
    %c0_i32_0 = arith.constant 0 : i32
    return %arg0, %arg1, %c0_i32 : i32, i32, i32
  }
}

</mosaic_0001>

<bundles_post_ra>
// kernel: enc_block_forward.1
= control target key start
LH: loop header
LB: loop body
LE: loop exit
PB: predicated region body
PF: predicated region fallthrough
CT: control target
= control target key end

     0   :  { %s1835_s24 = smov 0   ;;  %s1837_s25 = smov 0   ;;  %s2051_s0 = inlined_call_operand.vmem [shape: bf16[2,64,4], index: 0, kind: input, shape index: {}]   ;;  %s2052_s1 = inlined_call_operand.vmem [shape: bf16[3,12,8], index: 1, kind: input, shape index: {}]   ;;  %s2053_s2 = inlined_call_operand.vmem [shape: f32[3,1,8], index: 2, kind: input, shape index: {}]   ;;  %s2054_s3 = inlined_call_operand.vmem [shape: bf16[3,4,4], index: 3, kind: input, shape index: {}]   ;;  %s2055_s4 = inlined_call_operand.vmem [shape: f32[3,1,4], index: 4, kind: input, shape index: {}]   ;;  %s2056_s5 = inlined_call_operand.vmem [shape: bf16[16,8], index: 5, kind: input, shape index: {}]   ;;  %s2057_s6 = inlined_call_operand.vmem [shape: f32[1,8], index: 6, kind: input, shape index: {}]   ;;  %s2058_s7 = inlined_call_operand.vmem [shape: f32[2,32,8], index: 7, kind: output, shape index: {}]  }
   0x1   :  { %s1839_s26 = smov 0   ;;  %s1841_s27 = smov 0  }
   0x2   :  { %s1843_s28 = smov 0  }
   0x3 LB: > { %s26_s29 = sadd.s32 1, %s1778_s26  ;;  %s29_s30 = sadd.s32 1, %s1782_s27  ;;  %s1786_s28 = sphi %s1843_s28, %s17_s28   ;;  %s1782_s27 = sphi %s1841_s27, %s2062_s27   ;;  %s1778_s26 = sphi %s1839_s26, %s2061_s26   ;;  %s1774_s25 = sphi %s1837_s25, %s2060_s25   ;;  %s1770_s24 = sphi %s1835_s24, %s2059_s24  }
   0x4   : > { %p27_p0 = scmp.ge.s32.totalorder %s26_s29, 2  ;;  %p1417_p1 = scmp.ge.s32.totalorder %s1786_s28, 1 }
   0x5   : > { %p258_p2 = scmp.lt.s32.totalorder %s1786_s28, 5 }
   0x6   : > { %s2064_s29 = smov (%p27_p0, %s26_s29), 0  ;;  %s2066_s30 = smov (!%p27_p0, %s29_s30), %s1782_s27 }
   0x7   : > { %p259_p3 = pnand %p1417_p1, %p258_p2  ;;  %p31_p4 = scmp.ge.s32.totalorder %s2066_s30, 2 }
   0x8   : > { %s1418_s8 = sshll.u32 (!%p259_p3), %s1770_s24, 2  ;;  %p299_p5 = scmp.lt.s32.totalorder (!%p259_p3), %s1774_s25, 1 }
   0x9   : > { %s2068_s30 = smov (%p31_p4, %s2066_s30), 0  ;;  %262 = sbr.rel (%p259_p3) target bundleno = 2914 (0xb62), region = 48 }
   0xa   : > { %p301_p6 = scmp.lt.s32.totalorder (!%p259_p3), %s1418_s8, 7  ;;  %s1421_s9 = sshll.u32 (!%p259_p3), %s1770_s24, 1 }
   0xb   : > { %p311_p7 = scmp.lt.s32.totalorder (!%p259_p3), %s1421_s9, 3  ;;  %p1424_p8 = scmp.ne.s32.totalorder (!%p259_p3), %s1770_s24, 0 }
  0x10   : > { %s2070_s25 = smov (!%p299_p5, %s1774_s25), 1  ;;  %s2072_s8 = smov (!%p301_p6, %s1418_s8), 7 }
  0x11   : > { %s1419_s10 = sshll.u32 %s2070_s25, 3  ;;  %s1422_s16 = sshll.u32 %s2070_s25, 2  ;;  %vm323_vm0 = vcmask (!%p1424_p8), 25600   ;;  %vm325_vm1 = vcmask (!%p1424_p8), 29696   ;;  %vm327_vm2 = vcmask (!%p1424_p8), 31744   ;;  %v1788_v0 = vmov (!%p1424_p8), 0.0  }
  0x12   : > { %s304_s11 = sadd.s32 %s1419_s10, %s2072_s8  ;;  %s2074_s9 = smov (!%p311_p7, %s1421_s9), 3  ;;  %324 = vst.msk [vmem:[#allocation2] sm:$0x3] (!%p1424_p8), %vm323_vm0, %v1788_v0  ;;  %330 = vst.msk [vmem:[#allocation4 + $0x10] sm:$0x3] (!%p1424_p8), %vm323_vm0, %v1788_v0  ;;  %vm331_vm3 = vcmask (!%p1424_p8), 26624  }
  0x13   : > { %s1420_s12 = sshll.u32 %s304_s11, 2  ;;  %s314_s17 = sadd.s32 %s1422_s16, %s2074_s9  ;;  %326 = vst.msk [vmem:[#allocation3] sm:$0x3f] (!%p1424_p8), %vm325_vm1, %v1788_v0 }
  0x14   : > { %s306_s15 = scalar_lea.vmem %s2051_s0, %s1420_s12  ;;  %s1423_s18 = sshll.u32 %s314_s17, 3  ;;  %328 = vst.msk [vmem:[#allocation4] sm:$0xff] (!%p1424_p8), %vm327_vm2, %v1788_v0  ;;  %329 = vst.msk [vmem:[#allocation4 + $0x8] sm:$0xff] (!%p1424_p8), %vm327_vm2, %v1788_v0 }
  0x15   : > { %s1875_s21 = scalar_lea.vmem %s2058_s7, %s1423_s18  ;;  %322 = sbr.rel (%p1424_p8) target bundleno = 28 (0x1c), region = 52  ;;  %332 = vst.msk [vmem:[#allocation5] sm:$0x7] (!%p1424_p8), %vm331_vm3, %v1788_v0 }
  0x1c PF: > { %v1490_v1 = vld [vmem:[%s306_s15] sm:$0xff]   ;;  %v1497_v2 = vld [vmem:[%s306_s15 + $0x8] sm:$0xff]   ;;  %vm341_vm4 = vcmask 31744   ;;  %vm422_vm5 = vcmask 1045504   ;;  %vm605_vm6 = vcmask 25600   ;;  %s1789_s24 = smov 4  }
  0x1d   : > { %v1491_v3 = vunpack.c.l.bf16 %v1490_v1  ;;  %v1492_v4 = vunpack.c.h.bf16 %v1490_v1  ;;  %v1496_v5 = vunpack.c.h.bf16 %v1497_v2  ;;  %v1495_v6 = vunpack.c.l.bf16 %v1497_v2  ;;  %v1688_v7 = vld [vmem:[%s2052_s1] sm:$0x3f]   ;;  %s1790_s25 = smov 8   ;;  %s1791_s14 = smov 124  }
  0x1e   : > { %1560 = vmatprep.subr.msk.bf16.mxu0 %vm422_vm5, %v1688_v7  ;;  %v424_v8 = vsel %vm422_vm5, %v1688_v7, 0  ;;  %vm394_vm7 = vcmask 64512   ;;  %vm415_vm8 = vcmask 97280   ;;  %v497_v48 = vld [vmem:[%s2054_s3] sm:$0x3]  ;;  %vm511_vm9 = vcmask 1041408  }
  0x1f   : > { %342 = vst.msk [vmem:[#allocation2 + $0x2] sm:$0xff] %vm341_vm4, %v1491_v3  ;;  %343 = vst.msk [vmem:[#allocation2 + $0xa] sm:$0xff] %vm341_vm4, %v1492_v4  ;;  %1519 = vmatpush3.bf16.msra.mxu0 %v424_v8  ;;  %1561 = vmatprep.subr.msk.bf16.mxu1 %vm511_vm9, %v497_v48  ;;  %v513_v49 = vsel %vm511_vm9, %v497_v48, 0  ;;  %v1425_v50 = vld [vmem:[%s2053_s2] ss:$0 sm:$0xff]  ;;  %vm886_vm2 = vcmask 29696  }
  0x20   : > { %345 = vst.msk [vmem:[#allocation2 + $0x1a] sm:$0xff] %vm341_vm4, %v1496_v5  ;;  %344 = vst.msk [vmem:[#allocation2 + $0x12] sm:$0xff] %vm341_vm4, %v1495_v6  ;;  %1525 = vmatpush3.bf16.msra.mxu1 %v513_v49 }
  0x26   : > { %v350_v9 = vld [vmem:[#allocation2 + $0x1] sm:$0xff]  ;;  %v351_v10 = vld [vmem:[#allocation2 + $0x9] sm:$0xff] }
  0x27   : > { %v604_v11 = vld [vmem:[#allocation2 + $0x20] sm:$0x3]  ;;  %v1613_v12 = vpack.i.bf16 %v351_v10, %v350_v9  ;;  %v354_v14 = vld [vmem:[#allocation2 + $0x2] sm:$0xff]  ;;  %v355_v15 = vld [vmem:[#allocation2 + $0xa] sm:$0xff] }
  0x28   : > { %v346_v13 = vld [vmem:[#allocation2] sm:$0xff]  ;;  %v1623_v16 = vpack.i.bf16 %v355_v15, %v354_v14  ;;  %v352_v17 = vld [vmem:[#allocation2 + $0x11] sm:$0xff]  ;;  %v347_v24 = vld [vmem:[#allocation2 + $0x8] sm:$0xff] }
  0x29   : > { %606 = vst.msk [vmem:[#allocation2] sm:$0x3] %vm605_vm6, %v604_v11  ;;  %v353_v18 = vld [vmem:[#allocation2 + $0x19] sm:$0xff]  ;;  %1614 = vrot.lane.b32.xlu0 %v1613_v12, %s1789_s24  ;;  %v348_v32 = vld [vmem:[#allocation2 + $0x10] sm:$0xff] }
  0x2a   : > { %v356_v19 = vld [vmem:[#allocation2 + $0x12] sm:$0xff]  ;;  %v1618_v20 = vpack.i.bf16 %v353_v18, %v352_v17  ;;  %v357_v21 = vld [vmem:[#allocation2 + $0x1a] sm:$0xff]  ;;  %1624 = vrot.lane.b32.xlu1 %v1623_v16, %s1790_s25 }
  0x2b   : > { %v1628_v22 = vpack.i.bf16 %v357_v21, %v356_v19  ;;  %v349_v33 = vld [vmem:[#allocation2 + $0x18] sm:$0xff] }
  0x2d   : > { %1619 = vrot.lane.b32.xlu0 %v1618_v20, %s1789_s24 }
  0x2e   : > { %1629 = vrot.lane.b32.xlu1 %v1628_v22, %s1790_s25 }
  0x9b   : > { %v1615_v23 = vpop.permute.xlu0 %1614 }
  0x9c   : > { %v1617_v25 = vunpack.i.h.bf16 %v1615_v23  ;;  %v1616_v26 = vunpack.i.l.bf16 %v1615_v23  ;;  %v1625_v27 = vpop.permute.xlu1 %1624 }
  0x9d   : > { %v1627_v28 = vunpack.i.h.bf16 %v1625_v27  ;;  %v1626_v29 = vunpack.i.l.bf16 %v1625_v27 }
  0x9e   : > { %v390_v30 = vsel %vm341_vm4, %v346_v13, %v1616_v26  ;;  %v391_v31 = vsel %vm341_vm4, %v347_v24, %v1617_v25  ;;  %v1433_v13 = vld [vmem:[%s2055_s4] ss:$0 sm:$0xff] }
  0x9f   : > { %v1620_v34 = vpop.permute.xlu0 %1619  ;;  %v395_v35 = vsel %vm394_vm7, %v390_v30, %v1626_v29  ;;  %v396_v36 = vsel %vm394_vm7, %v391_v31, %v1627_v28 }
  0xa0   : > { %v1622_v37 = vunpack.i.h.bf16 %v1620_v34  ;;  %v1621_v38 = vunpack.i.l.bf16 %v1620_v34  ;;  %v1630_v39 = vpop.permute.xlu1 %1629  ;;  %v399_v40 = vpack.c.bf16 %v396_v36, %v395_v35 }
  0xa1   : > { %v1632_v41 = vunpack.i.h.bf16 %v1630_v39  ;;  %v1631_v42 = vunpack.i.l.bf16 %v1630_v39 }
  0xa2   : > { %v393_v43 = vsel %vm341_vm4, %v349_v33, %v1622_v37  ;;  %v392_v44 = vsel %vm341_vm4, %v348_v32, %v1621_v38  ;;  %1520 = vmatprep.mubr.msk.bf16.mxu0 %vm415_vm8, %v399_v40 }
  0xa3   : > { %v397_v45 = vsel %vm394_vm7, %v392_v44, %v1631_v42  ;;  %v398_v46 = vsel %vm394_vm7, %v393_v43, %v1632_v41 }
  0xa4   : > { %v400_v47 = vpack.c.bf16 %v398_v46, %v397_v45 }
  0xa6   : > { %1521 = vmatmul.mubr.msk.bf16.vlgmr.msra.gmra.mrb[0].mxu0 %vm415_vm8, %v400_v47 }
 0x179   : > { %v1522_v51 = vpop.f32.mrb[0].mxu0 }
 0x17a   : > { %v469_v52 = vadd.f32 %v1522_v51, %v1425_v50  ;;  %v460_v53 = vpop.f32.mrb[1].mxu0 }
 0x17b   : > { %v461_v54 = vadd.f32 %v1425_v50, %v460_v53  ;;  %v1523_v55 = vpop.f32.mrb[2].mxu0 }
 0x17c   : > { %v483_v56 = vmul.f32 1.442695, %v469_v52  ;;  %v472_v57 = vadd.f32 %v1523_v55, %v1425_v50  ;;  %v463_v58 = vpop.f32.mrb[3].mxu0  ;;  %vm477_vm13 = vcmp.gt.f32.partialorder %v469_v52, 0.0 }
 0x17d   : > { %v479_v59 = vmul.f32 1.442695, %v461_v54  ;;  %v464_v60 = vadd.f32 %v1425_v50, %v463_v58  ;;  %vm475_vm11 = vcmp.gt.f32.partialorder %v461_v54, 0.0  ;;  %v1689_v50 = vld [vmem:[%s2052_s1 + $0x8] sm:$0x3f]  }
 0x17e   : > { %1692 = vpow2.f32 %v483_v56  ;;  %v485_v61 = vmul.f32 1.442695, %v472_v57  ;;  %vm478_vm10 = vcmp.gt.f32.partialorder %v472_v57, 0.0  ;;  %1562 = vmatprep.subr.msk.bf16.mxu0 %vm422_vm5, %v1689_v50  ;;  %v704_v51 = vsel %vm422_vm5, %v1689_v50, 0 }
 0x17f   : > { %1694 = vpow2.f32 %v479_v59  ;;  %v481_v62 = vmul.f32 1.442695, %v464_v60  ;;  %vm476_vm12 = vcmp.gt.f32.partialorder %v464_v60, 0.0  ;;  %1531 = vmatpush3.bf16.msra.mxu0 %v704_v51 }
 0x180   : > { %1696 = vpow2.f32 %v485_v61 }
 0x181   : > { %1698 = vpow2.f32 %v481_v62 }
 0x188   : > { %v1693_v63 = vpop.eup %1692 }
 0x189   : > { %v1695_v0 = vpop.eup %1694  ;;  %v1431_v4 = vadd.f32 -1.0, %v1693_v63 }
 0x18a   : > { %v1697_v1 = vpop.eup %1696  ;;  %v1429_v2 = vadd.f32 -1.0, %v1695_v0 }
 0x18b   : > { %v1699_v3 = vpop.eup %1698  ;;  %v1432_v5 = vadd.f32 -1.0, %v1697_v1  ;;  %v493_v10 = vsel %vm477_vm13, %v469_v52, %v1431_v4 }
 0x18c   : > { %v1430_v6 = vadd.f32 -1.0, %v1699_v3  ;;  %v491_v8 = vsel %vm475_vm11, %v461_v54, %v1429_v2 }
 0x18d   : > { %v494_v7 = vsel %vm478_vm10, %v472_v57, %v1432_v5 }
 0x18e   : > { %v492_v9 = vsel %vm476_vm12, %v464_v60, %v1430_v6  ;;  %v496_v12 = vpack.c.bf16 %v494_v7, %v493_v10 }
 0x18f   : > { %v495_v11 = vpack.c.bf16 %v492_v9, %v491_v8 }
 0x191   : > { %1526 = vmatprep.mubr.msk.bf16.mxu1 %vm341_vm4, %v495_v11 }
 0x192   : > { %1527 = vmatmul.mubr.msk.bf16.vlgmr.msra.gmra.mrb[0].mxu1 %vm341_vm4, %v496_v12 }
 0x265   : > { %v1528_v14 = vpop.f32.mrb[0].mxu1 }
 0x266   : > { %v558_v15 = vadd.f32 %v1528_v14, %v1433_v13  ;;  %v549_v16 = vpop.f32.mrb[1].mxu1 }
 0x267   : > { %v550_v17 = vadd.f32 %v1433_v13, %v549_v16  ;;  %v1529_v18 = vpop.f32.mrb[2].mxu1 }
 0x268   : > { %v572_v19 = vmul.f32 1.442695, %v558_v15  ;;  %v561_v20 = vadd.f32 %v1529_v18, %v1433_v13  ;;  %v552_v21 = vpop.f32.mrb[3].mxu1  ;;  %vm566_vm0 = vcmp.gt.f32.partialorder %v558_v15, 0.0 }
 0x269   : > { %v568_v22 = vmul.f32 1.442695, %v550_v17  ;;  %v553_v23 = vadd.f32 %v1433_v13, %v552_v21  ;;  %vm564_vm14 = vcmp.gt.f32.partialorder %v550_v17, 0.0 }
 0x26a   : > { %1700 = vpow2.f32 %v572_v19  ;;  %v574_v24 = vmul.f32 1.442695, %v561_v20  ;;  %vm567_vm1 = vcmp.gt.f32.partialorder %v561_v20, 0.0 }
 0x26b   : > { %1702 = vpow2.f32 %v568_v22  ;;  %v570_v25 = vmul.f32 1.442695, %v553_v23  ;;  %vm565_vm15 = vcmp.gt.f32.partialorder %v553_v23, 0.0 }
 0x26c   : > { %1704 = vpow2.f32 %v574_v24 }
 0x26d   : > { %1706 = vpow2.f32 %v570_v25 }
 0x274   : > { %v1701_v26 = vpop.eup %1700 }
 0x275   : > { %v1703_v27 = vpop.eup %1702  ;;  %v1438_v33 = vadd.f32 -1.0, %v1701_v26 }
 0x276   : > { %v1705_v28 = vpop.eup %1704  ;;  %v1436_v29 = vadd.f32 -1.0, %v1703_v27  ;;  %v1451_v27 = vld [vmem:[%s2054_s3 + $0x2] sm:$0x3] }
 0x277   : > { %v1707_v30 = vpop.eup %1706  ;;  %v1439_v35 = vadd.f32 -1.0, %v1705_v28  ;;  %v582_v36 = vsel %vm566_vm0, %v558_v15, %v1438_v33  ;;  %1563 = vmatprep.subr.msk.bf16.mxu1 %vm511_vm9, %v1451_v27  ;;  %v794_v28 = vsel %vm511_vm9, %v1451_v27, 0 }
 0x278   : > { %v580_v31 = vsel %vm564_vm14, %v550_v17, %v1436_v29  ;;  %v1437_v32 = vadd.f32 -1.0, %v1707_v30  ;;  %1537 = vmatpush3.bf16.msra.mxu1 %v794_v28  ;;  %v1443_v29 = vld [vmem:[%s2053_s2 + $0x1] ss:$0 sm:$0xff]  ;;  %v1690_v28 = vld [vmem:[%s2052_s1 + $0x10] sm:$0x3f]  }
 0x279   : > { %588 = vrot.lane.b32.xlu0 %v580_v31, %s1789_s24  ;;  %v583_v37 = vsel %vm567_vm1, %v561_v20, %v1439_v35  ;;  %1564 = vmatprep.subr.msk.bf16.mxu0 %vm422_vm5, %v1690_v28 }
 0x27a   : > { %v581_v34 = vsel %vm565_vm15, %v553_v23, %v1437_v32 }
 0x27b   : > { %590 = vrot.lane.b32.xlu1 %v581_v34, %s1789_s24 }
 0x27d   : > { %592 = vrot.lane.b32.xlu0 %v582_v36, %s1789_s24 }
 0x27f   : > { %594 = vrot.lane.b32.xlu1 %v583_v37, %s1789_s24 }
 0x2eb   : > { %v589_v38 = vpop.permute.xlu0 %588 }
 0x2ec   : > { %v600_v39 = vadd.f32 %v589_v38, %v491_v8 }
 0x2ed   : > { %v591_v40 = vpop.permute.xlu1 %590 }
 0x2ee   : > { %v601_v41 = vadd.f32 %v591_v40, %v492_v9  ;;  %611 = vrot.lane.b32.xlu0 %v600_v39, %s1791_s14 }
 0x2ef   : > { %v593_v42 = vpop.permute.xlu0 %592 }
 0x2f0   : > { %v602_v43 = vadd.f32 %v593_v42, %v493_v10  ;;  %613 = vrot.lane.b32.xlu1 %v601_v41, %s1791_s14 }
 0x2f1   : > { %v595_v44 = vpop.permute.xlu1 %594 }
 0x2f2   : > { %v603_v45 = vadd.f32 %v595_v44, %v494_v7  ;;  %615 = vrot.lane.b32.xlu0 %v602_v43, %s1791_s14 }
 0x2f4   : > { %617 = vrot.lane.b32.xlu1 %v603_v45, %s1791_s14 }
 0x360   : > { %v612_v46 = vpop.permute.xlu0 %611 }
 0x361   : > { %623 = vst.msk [vmem:[#allocation3 + $0x6] sm:$0xff] %vm341_vm4, %v612_v46 }
 0x362   : > { %v614_v47 = vpop.permute.xlu1 %613 }
 0x363   : > { %624 = vst.msk [vmem:[#allocation3 + $0xe] sm:$0xff] %vm341_vm4, %v614_v47 }
 0x364   : > { %v616_v48 = vpop.permute.xlu0 %615 }
 0x365   : > { %625 = vst.msk [vmem:[#allocation3 + $0x16] sm:$0xff] %vm341_vm4, %v616_v48 }
 0x366   : > { %v618_v49 = vpop.permute.xlu1 %617 }
 0x367   : > { %626 = vst.msk [vmem:[#allocation3 + $0x1e] sm:$0xff] %vm341_vm4, %v618_v49 }
 0x368   : > { %v631_v52 = vld [vmem:[#allocation3 + $0x3] sm:$0xff] }
 0x369   : > { %v635_v56 = vld [vmem:[#allocation3 + $0x6] sm:$0xff] }
 0x36a   : > { %v632_v53 = vld [vmem:[#allocation3 + $0xb] sm:$0xff]  ;;  %v627_v57 = vld [vmem:[#allocation3] sm:$0xff] }
 0x36b   : > { %v1633_v54 = vpack.i.bf16 %v632_v53, %v631_v52  ;;  %v636_v55 = vld [vmem:[#allocation3 + $0xe] sm:$0xff] }
 0x36c   : > { %v633_v58 = vld [vmem:[#allocation3 + $0x13] sm:$0xff]  ;;  %v1643_v61 = vpack.i.bf16 %v636_v55, %v635_v56  ;;  %v628_v7 = vld [vmem:[#allocation3 + $0x8] sm:$0xff] }
 0x36d   : > { %1634 = vrot.lane.b32.xlu0 %v1633_v54, %s1789_s24  ;;  %v637_v0 = vld [vmem:[#allocation3 + $0x16] sm:$0xff] }
 0x36e   : > { %v634_v59 = vld [vmem:[#allocation3 + $0x1b] sm:$0xff]  ;;  %v629_v18 = vld [vmem:[#allocation3 + $0x10] sm:$0xff]  ;;  %v1453_v56 = vld [vmem:[%s2055_s4 + $0x1] ss:$0 sm:$0xff] }
 0x36f   : > { %v885_v60 = vld [vmem:[#allocation3 + $0x20] sm:$0x3f]  ;;  %v1638_v62 = vpack.i.bf16 %v634_v59, %v633_v58  ;;  %v630_v19 = vld [vmem:[#allocation3 + $0x18] sm:$0xff] }
 0x370   : > { %887 = vst.msk [vmem:[#allocation3] sm:$0x3f] %vm886_vm2, %v885_v60  ;;  %v638_v63 = vld [vmem:[#allocation3 + $0x1e] sm:$0xff] }
 0x371   : > { %1644 = vrot.lane.b32.xlu0 %v1643_v61, %s1790_s25  ;;  %1639 = vrot.lane.b32.xlu1 %v1638_v62, %s1789_s24  ;;  %v1648_v1 = vpack.i.bf16 %v638_v63, %v637_v0 }
 0x375   : > { %1649 = vrot.lane.b32.xlu1 %v1648_v1, %s1790_s25 }
 0x3df   : > { %v1635_v2 = vpop.permute.xlu0 %1634 }
 0x3e0   : > { %v1637_v3 = vunpack.i.h.bf16 %v1635_v2  ;;  %v1636_v4 = vunpack.i.l.bf16 %v1635_v2 }
 0x3e2   : > { %v672_v10 = vsel %vm341_vm4, %v628_v7, %v1637_v3  ;;  %v671_v11 = vsel %vm341_vm4, %v627_v57, %v1636_v4 }
 0x3e3   : > { %v1640_v5 = vpop.permute.xlu1 %1639  ;;  %v1645_v6 = vpop.permute.xlu0 %1644 }
 0x3e4   : > { %v1647_v8 = vunpack.i.h.bf16 %v1645_v6  ;;  %v1646_v9 = vunpack.i.l.bf16 %v1645_v6  ;;  %v1642_v12 = vunpack.i.h.bf16 %v1640_v5  ;;  %v1641_v13 = vunpack.i.l.bf16 %v1640_v5 }
 0x3e6   : > { %v675_v14 = vsel %vm394_vm7, %v671_v11, %v1646_v9  ;;  %v676_v15 = vsel %vm394_vm7, %v672_v10, %v1647_v8  ;;  %v673_v22 = vsel %vm341_vm4, %v629_v18, %v1641_v13  ;;  %v674_v23 = vsel %vm341_vm4, %v630_v19, %v1642_v12 }
 0x3e7   : > { %v679_v16 = vpack.c.bf16 %v676_v15, %v675_v14  ;;  %v1650_v17 = vpop.permute.xlu1 %1649 }
 0x3e8   : > { %v1652_v20 = vunpack.i.h.bf16 %v1650_v17  ;;  %v1651_v21 = vunpack.i.l.bf16 %v1650_v17 }
 0x3e9   : > { %1532 = vmatprep.mubr.msk.bf16.mxu0 %vm415_vm8, %v679_v16 }
 0x3ea   : > { %v677_v24 = vsel %vm394_vm7, %v673_v22, %v1651_v21  ;;  %v678_v25 = vsel %vm394_vm7, %v674_v23, %v1652_v20 }
 0x3eb   : > { %v680_v26 = vpack.c.bf16 %v678_v25, %v677_v24 }
 0x3ed   : > { %1533 = vmatmul.mubr.msk.bf16.vlgmr.msra.gmra.mrb[4].mxu0 %vm415_vm8, %v680_v26 }
 0x4c0   : > { %v1534_v30 = vpop.f32.mrb[4].mxu0 }
 0x4c1   : > { %v749_v31 = vadd.f32 %v1534_v30, %v1443_v29  ;;  %v740_v32 = vpop.f32.mrb[5].mxu0  ;;  %v912_v30 = vld [vmem:[#allocation4 + $0x9] sm:$0xff] }
 0x4c2   : > { %v741_v33 = vadd.f32 %v1443_v29, %v740_v32  ;;  %v1535_v34 = vpop.f32.mrb[6].mxu0 }
 0x4c3   : > { %v763_v35 = vmul.f32 1.442695, %v749_v31  ;;  %v752_v36 = vadd.f32 %v1535_v34, %v1443_v29  ;;  %v743_v37 = vpop.f32.mrb[7].mxu0  ;;  %vm757_vm12 = vcmp.gt.f32.partialorder %v749_v31, 0.0 }
 0x4c4   : > { %v759_v38 = vmul.f32 1.442695, %v741_v33  ;;  %v744_v39 = vadd.f32 %v1443_v29, %v743_v37  ;;  %vm755_vm10 = vcmp.gt.f32.partialorder %v741_v33, 0.0  ;;  %v909_v37 = vld [vmem:[#allocation4 + $0x8] sm:$0xff] }
 0x4c5   : > { %1708 = vpow2.f32 %v763_v35  ;;  %v765_v40 = vmul.f32 1.442695, %v752_v36  ;;  %vm758_vm3 = vcmp.gt.f32.partialorder %v752_v36, 0.0  ;;  %v908_v35 = vld [vmem:[#allocation4] sm:$0xff] }
 0x4c6   : > { %1710 = vpow2.f32 %v759_v38  ;;  %v761_v41 = vmul.f32 1.442695, %v744_v39  ;;  %vm756_vm11 = vcmp.gt.f32.partialorder %v744_v39, 0.0 }
 0x4c7   : > { %1712 = vpow2.f32 %v765_v40 }
 0x4c8   : > { %1714 = vpow2.f32 %v761_v41 }
 0x4cf   : > { %v1709_v42 = vpop.eup %1708 }
 0x4d0   : > { %v1711_v43 = vpop.eup %1710  ;;  %v1449_v47 = vadd.f32 -1.0, %v1709_v42 }
 0x4d1   : > { %v1713_v44 = vpop.eup %1712  ;;  %v1447_v45 = vadd.f32 -1.0, %v1711_v43 }
 0x4d2   : > { %v1715_v46 = vpop.eup %1714  ;;  %v1450_v48 = vadd.f32 -1.0, %v1713_v44  ;;  %v773_v53 = vsel %vm757_vm12, %v749_v31, %v1449_v47  ;;  %v985_v31 = vsel %vm422_vm5, %v1690_v28, 0 }
 0x4d3   : > { %v1448_v49 = vadd.f32 -1.0, %v1715_v46  ;;  %v771_v51 = vsel %vm755_vm10, %v741_v33, %v1447_v45  ;;  %1543 = vmatpush3.bf16.msra.mxu0 %v985_v31 }
 0x4d4   : > { %v774_v50 = vsel %vm758_vm3, %v752_v36, %v1450_v48 }
 0x4d5   : > { %v772_v52 = vsel %vm756_vm11, %v744_v39, %v1448_v49  ;;  %v776_v55 = vpack.c.bf16 %v774_v50, %v773_v53 }
 0x4d6   : > { %v775_v54 = vpack.c.bf16 %v772_v52, %v771_v51 }
 0x4d8   : > { %1538 = vmatprep.mubr.msk.bf16.mxu1 %vm341_vm4, %v775_v54 }
 0x4d9   : > { %1539 = vmatmul.mubr.msk.bf16.vlgmr.msra.gmra.mrb[4].mxu1 %vm341_vm4, %v776_v55 }
 0x5ac   : > { %v1540_v57 = vpop.f32.mrb[4].mxu1 }
 0x5ad   : > { %v839_v58 = vadd.f32 %v1540_v57, %v1453_v56  ;;  %v830_v59 = vpop.f32.mrb[5].mxu1 }
 0x5ae   : > { %v831_v60 = vadd.f32 %v1453_v56, %v830_v59  ;;  %v1541_v61 = vpop.f32.mrb[6].mxu1 }
 0x5af   : > { %v853_v62 = vmul.f32 1.442695, %v839_v58  ;;  %v842_v63 = vadd.f32 %v1541_v61, %v1453_v56  ;;  %v833_v0 = vpop.f32.mrb[7].mxu1  ;;  %vm847_vm15 = vcmp.gt.f32.partialorder %v839_v58, 0.0 }
 0x5b0   : > { %v849_v1 = vmul.f32 1.442695, %v831_v60  ;;  %v834_v2 = vadd.f32 %v1453_v56, %v833_v0  ;;  %vm845_vm13 = vcmp.gt.f32.partialorder %v831_v60, 0.0 }
 0x5b1   : > { %1716 = vpow2.f32 %v853_v62  ;;  %v855_v3 = vmul.f32 1.442695, %v842_v63  ;;  %vm848_vm0 = vcmp.gt.f32.partialorder %v842_v63, 0.0 }
 0x5b2   : > { %1718 = vpow2.f32 %v849_v1  ;;  %v851_v4 = vmul.f32 1.442695, %v834_v2  ;;  %vm846_vm14 = vcmp.gt.f32.partialorder %v834_v2, 0.0 }
 0x5b3   : > { %1720 = vpow2.f32 %v855_v3 }
 0x5b4   : > { %1722 = vpow2.f32 %v851_v4 }
 0x5bb   : > { %v1717_v5 = vpop.eup %1716 }
 0x5bc   : > { %v1719_v6 = vpop.eup %1718  ;;  %v1458_v12 = vadd.f32 -1.0, %v1717_v5 }
 0x5bd   : > { %v1721_v7 = vpop.eup %1720  ;;  %v1456_v8 = vadd.f32 -1.0, %v1719_v6 }
 0x5be   : > { %v1723_v9 = vpop.eup %1722  ;;  %v1459_v14 = vadd.f32 -1.0, %v1721_v7  ;;  %v863_v15 = vsel %vm847_vm15, %v839_v58, %v1458_v12 }
 0x5bf   : > { %v861_v10 = vsel %vm845_vm13, %v831_v60, %v1456_v8  ;;  %v1457_v11 = vadd.f32 -1.0, %v1723_v9  ;;  %v1471_v8 = vld [vmem:[%s2054_s3 + $0x4] sm:$0x3] }
 0x5c0   : > { %869 = vrot.lane.b32.xlu0 %v861_v10, %s1789_s24  ;;  %v864_v16 = vsel %vm848_vm0, %v842_v63, %v1459_v14  ;;  %1565 = vmatprep.subr.msk.bf16.mxu1 %vm511_vm9, %v1471_v8  ;;  %v1075_v9 = vsel %vm511_vm9, %v1471_v8, 0  ;;  %v1463_v10 = vld [vmem:[%s2053_s2 + $0x2] ss:$0 sm:$0xff]  ;;  %vm1793_vm0 = vmmov 0  }
 0x5c1   : > { %v862_v13 = vsel %vm846_vm14, %v834_v2, %v1457_v11  ;;  %1549 = vmatpush3.bf16.msra.mxu1 %v1075_v9 }
 0x5c2   : > { %871 = vrot.lane.b32.xlu1 %v862_v13, %s1789_s24 }
 0x5c4   : > { %873 = vrot.lane.b32.xlu0 %v863_v15, %s1789_s24 }
 0x5c6   : > { %875 = vrot.lane.b32.xlu1 %v864_v16, %s1789_s24 }
 0x632   : > { %v870_v17 = vpop.permute.xlu0 %869 }
 0x633   : > { %v881_v18 = vadd.f32 %v870_v17, %v771_v51 }
 0x634   : > { %v872_v19 = vpop.permute.xlu1 %871 }
 0x635   : > { %v882_v20 = vadd.f32 %v872_v19, %v772_v52  ;;  %892 = vrot.lane.b32.xlu0 %v881_v18, %s1791_s14 }
 0x636   : > { %v874_v21 = vpop.permute.xlu0 %873 }
 0x637   : > { %v883_v22 = vadd.f32 %v874_v21, %v773_v53  ;;  %894 = vrot.lane.b32.xlu1 %v882_v20, %s1791_s14 }
 0x638   : > { %v876_v23 = vpop.permute.xlu1 %875 }
 0x639   : > { %v884_v24 = vadd.f32 %v876_v23, %v774_v50  ;;  %896 = vrot.lane.b32.xlu0 %v883_v22, %s1791_s14 }
 0x63b   : > { %898 = vrot.lane.b32.xlu1 %v884_v24, %s1791_s14 }
 0x6a7   : > { %v893_v25 = vpop.permute.xlu0 %892 }
 0x6a8   : > { %904 = vst.msk [vmem:[#allocation4 + $0x12] sm:$0xff] %vm341_vm4, %v893_v25 }
 0x6a9   : > { %v895_v26 = vpop.permute.xlu1 %894 }
 0x6aa   : > { %905 = vst.msk [vmem:[#allocation4 + $0x1a] sm:$0xff] %vm341_vm4, %v895_v26 }
 0x6ab   : > { %v897_v27 = vpop.permute.xlu0 %896 }
 0x6ac   : > { %906 = vst.msk [vmem:[#allocation4 + $0x22] sm:$0xff] %vm341_vm4, %v897_v27 }
 0x6ad   : > { %v899_v29 = vpop.permute.xlu1 %898 }
 0x6ae   : > { %907 = vst.msk [vmem:[#allocation4 + $0x2a] sm:$0xff] %vm341_vm4, %v899_v29 }
 0x6af   : > { %v913_v32 = vld [vmem:[#allocation4 + $0x11] sm:$0xff] }
 0x6b0   : > { %v1653_v33 = vpack.i.bf16 %v913_v32, %v912_v30  ;;  %v916_v36 = vld [vmem:[#allocation4 + $0x12] sm:$0xff] }
 0x6b1   : > { %v917_v34 = vld [vmem:[#allocation4 + $0x1a] sm:$0xff]  ;;  %v910_v43 = vld [vmem:[#allocation4 + $0x10] sm:$0xff] }
 0x6b2   : > { %1654 = vrot.lane.b32.xlu0 %v1653_v33, %s1789_s24  ;;  %v914_v38 = vld [vmem:[#allocation4 + $0x19] sm:$0xff]  ;;  %v1663_v41 = vpack.i.bf16 %v917_v34, %v916_v36 }
 0x6b3   : > { %v915_v39 = vld [vmem:[#allocation4 + $0x21] sm:$0xff]  ;;  %v911_v0 = vld [vmem:[#allocation4 + $0x18] sm:$0xff] }
 0x6b4   : > { %v1166_v40 = vld [vmem:[#allocation4 + $0x20] sm:$0xff]  ;;  %v1658_v42 = vpack.i.bf16 %v915_v39, %v914_v38 }
 0x6b5   : > { %1169 = vst.msk [vmem:[#allocation4] sm:$0xff] %vm341_vm4, %v1166_v40  ;;  %v919_v44 = vld [vmem:[#allocation4 + $0x2a] sm:$0xff]  ;;  %v918_v47 = vld [vmem:[#allocation4 + $0x22] sm:$0xff] }
 0x6b6   : > { %v1167_v45 = vld [vmem:[#allocation4 + $0x28] sm:$0xff]  ;;  %v1168_v46 = vld [vmem:[#allocation4 + $0x30] sm:$0x3]  ;;  %1664 = vrot.lane.b32.xlu0 %v1663_v41, %s1790_s25  ;;  %1659 = vrot.lane.b32.xlu1 %v1658_v42, %s1789_s24  ;;  %v1668_v48 = vpack.i.bf16 %v919_v44, %v918_v47 }
 0x6b7   : > { %1170 = vst.msk [vmem:[#allocation4 + $0x8] sm:$0xff] %vm341_vm4, %v1167_v45 }
 0x6b8   : > { %1171 = vst.msk [vmem:[#allocation4 + $0x10] sm:$0x3] %vm605_vm6, %v1168_v46 }
 0x6ba   : > { %1669 = vrot.lane.b32.xlu1 %v1668_v48, %s1790_s25 }
 0x724   : > { %v1655_v49 = vpop.permute.xlu0 %1654 }
 0x725   : > { %v1657_v50 = vunpack.i.h.bf16 %v1655_v49  ;;  %v1656_v51 = vunpack.i.l.bf16 %v1655_v49 }
 0x727   : > { %v953_v56 = vsel %vm341_vm4, %v909_v37, %v1657_v50  ;;  %v952_v57 = vsel %vm341_vm4, %v908_v35, %v1656_v51  ;;  %v1473_v37 = vld [vmem:[%s2055_s4 + $0x2] ss:$0 sm:$0xff] }
 0x728   : > { %v1660_v52 = vpop.permute.xlu1 %1659  ;;  %v1665_v53 = vpop.permute.xlu0 %1664 }
 0x729   : > { %v1667_v54 = vunpack.i.h.bf16 %v1665_v53  ;;  %v1666_v55 = vunpack.i.l.bf16 %v1665_v53  ;;  %v1662_v58 = vunpack.i.h.bf16 %v1660_v52  ;;  %v1661_v59 = vunpack.i.l.bf16 %v1660_v52 }
 0x72b   : > { %v956_v60 = vsel %vm394_vm7, %v952_v57, %v1666_v55  ;;  %v957_v61 = vsel %vm394_vm7, %v953_v56, %v1667_v54  ;;  %v955_v3 = vsel %vm341_vm4, %v911_v0, %v1662_v58  ;;  %v954_v4 = vsel %vm341_vm4, %v910_v43, %v1661_v59 }
 0x72c   : > { %v960_v62 = vpack.c.bf16 %v957_v61, %v956_v60  ;;  %v1670_v63 = vpop.permute.xlu1 %1669 }
 0x72d   : > { %v1672_v1 = vunpack.i.h.bf16 %v1670_v63  ;;  %v1671_v2 = vunpack.i.l.bf16 %v1670_v63 }
 0x72e   : > { %1544 = vmatprep.mubr.msk.bf16.mxu0 %vm415_vm8, %v960_v62 }
 0x72f   : > { %v958_v5 = vsel %vm394_vm7, %v954_v4, %v1671_v2  ;;  %v959_v6 = vsel %vm394_vm7, %v955_v3, %v1672_v1 }
 0x730   : > { %v961_v7 = vpack.c.bf16 %v959_v6, %v958_v5 }
 0x732   : > { %1545 = vmatmul.mubr.msk.bf16.vlgmr.msra.gmra.mrb[8].mxu0 %vm415_vm8, %v961_v7 }
 0x805   : > { %v1546_v11 = vpop.f32.mrb[8].mxu0 }
 0x806   : > { %v1030_v12 = vadd.f32 %v1546_v11, %v1463_v10  ;;  %v1021_v13 = vpop.f32.mrb[9].mxu0 }
 0x807   : > { %v1022_v14 = vadd.f32 %v1463_v10, %v1021_v13  ;;  %v1547_v15 = vpop.f32.mrb[10].mxu0 }
 0x808   : > { %v1044_v16 = vmul.f32 1.442695, %v1030_v12  ;;  %v1033_v17 = vadd.f32 %v1547_v15, %v1463_v10  ;;  %v1024_v18 = vpop.f32.mrb[11].mxu0  ;;  %vm1038_vm1 = vcmp.gt.f32.partialorder %v1030_v12, 0.0 }
 0x809   : > { %v1040_v19 = vmul.f32 1.442695, %v1022_v14  ;;  %v1025_v20 = vadd.f32 %v1463_v10, %v1024_v18  ;;  %vm1036_vm6 = vcmp.gt.f32.partialorder %v1022_v14, 0.0 }
 0x80a   : > { %1724 = vpow2.f32 %v1044_v16  ;;  %v1046_v21 = vmul.f32 1.442695, %v1033_v17  ;;  %vm1039_vm5 = vcmp.gt.f32.partialorder %v1033_v17, 0.0 }
 0x80b   : > { %1726 = vpow2.f32 %v1040_v19  ;;  %v1042_v22 = vmul.f32 1.442695, %v1025_v20  ;;  %vm1037_vm9 = vcmp.gt.f32.partialorder %v1025_v20, 0.0 }
 0x80c   : > { %1728 = vpow2.f32 %v1046_v21 }
 0x80d   : > { %1730 = vpow2.f32 %v1042_v22 }
 0x814   : > { %v1725_v23 = vpop.eup %1724 }
 0x815   : > { %v1727_v24 = vpop.eup %1726  ;;  %v1469_v28 = vadd.f32 -1.0, %v1725_v23 }
 0x816   : > { %v1729_v25 = vpop.eup %1728  ;;  %v1467_v26 = vadd.f32 -1.0, %v1727_v24 }
 0x817   : > { %v1731_v27 = vpop.eup %1730  ;;  %v1470_v29 = vadd.f32 -1.0, %v1729_v25  ;;  %v1054_v34 = vsel %vm1038_vm1, %v1030_v12, %v1469_v28 }
 0x818   : > { %v1468_v30 = vadd.f32 -1.0, %v1731_v27  ;;  %v1052_v32 = vsel %vm1036_vm6, %v1022_v14, %v1467_v26  ;;  %v1691_v26 = vld [vmem:[%s2056_s5] sm:$0xff]   ;;  %v1792_v27 = vmov 0.0   ;;  %vm1273_vm6 = vcmask 130048  }
 0x819   : > { %v1055_v31 = vsel %vm1039_vm5, %v1033_v17, %v1470_v29  ;;  %1554 = vmatprep.subr.bf16.mxu0 %v1792_v27  ;;  %1556 = vmatprep.mubr.msk.bf16.mxu0 %vm1793_vm0, %v1792_v27  ;;  %vm1321_vm5 = vcmask 26624  }
 0x81a   : > { %v1053_v33 = vsel %vm1037_vm9, %v1025_v20, %v1468_v30  ;;  %v1057_v36 = vpack.c.bf16 %v1055_v31, %v1054_v34  ;;  %1555 = vmatpush3.bf16.msra.mxu0 %v1691_v26 }
 0x81b   : > { %v1056_v35 = vpack.c.bf16 %v1053_v33, %v1052_v32 }
 0x81d   : > { %1550 = vmatprep.mubr.msk.bf16.mxu1 %vm341_vm4, %v1056_v35 }
 0x81e   : > { %1551 = vmatmul.mubr.msk.bf16.vlgmr.msra.gmra.mrb[8].mxu1 %vm341_vm4, %v1057_v36 }
 0x8f1   : > { %v1552_v38 = vpop.f32.mrb[8].mxu1 }
 0x8f2   : > { %v1120_v39 = vadd.f32 %v1552_v38, %v1473_v37  ;;  %v1111_v40 = vpop.f32.mrb[9].mxu1 }
 0x8f3   : > { %v1112_v41 = vadd.f32 %v1473_v37, %v1111_v40  ;;  %v1553_v42 = vpop.f32.mrb[10].mxu1 }
 0x8f4   : > { %v1134_v43 = vmul.f32 1.442695, %v1120_v39  ;;  %v1123_v44 = vadd.f32 %v1553_v42, %v1473_v37  ;;  %v1114_v45 = vpop.f32.mrb[11].mxu1  ;;  %vm1128_vm10 = vcmp.gt.f32.partialorder %v1120_v39, 0.0 }
 0x8f5   : > { %v1130_v46 = vmul.f32 1.442695, %v1112_v41  ;;  %v1115_v47 = vadd.f32 %v1473_v37, %v1114_v45  ;;  %vm1126_vm2 = vcmp.gt.f32.partialorder %v1112_v41, 0.0 }
 0x8f6   : > { %1732 = vpow2.f32 %v1134_v43  ;;  %v1136_v48 = vmul.f32 1.442695, %v1123_v44  ;;  %vm1129_vm11 = vcmp.gt.f32.partialorder %v1123_v44, 0.0 }
 0x8f7   : > { %1734 = vpow2.f32 %v1130_v46  ;;  %v1132_v49 = vmul.f32 1.442695, %v1115_v47  ;;  %vm1127_vm3 = vcmp.gt.f32.partialorder %v1115_v47, 0.0 }
 0x8f8   : > { %1736 = vpow2.f32 %v1136_v48 }
 0x8f9   : > { %1738 = vpow2.f32 %v1132_v49 }
 0x900   : > { %v1733_v50 = vpop.eup %1732 }
 0x901   : > { %v1735_v51 = vpop.eup %1734  ;;  %v1478_v57 = vadd.f32 -1.0, %v1733_v50 }
 0x902   : > { %v1737_v52 = vpop.eup %1736  ;;  %v1476_v53 = vadd.f32 -1.0, %v1735_v51 }
 0x903   : > { %v1739_v54 = vpop.eup %1738  ;;  %v1479_v59 = vadd.f32 -1.0, %v1737_v52  ;;  %v1144_v60 = vsel %vm1128_vm10, %v1120_v39, %v1478_v57 }
 0x904   : > { %v1142_v55 = vsel %vm1126_vm2, %v1112_v41, %v1476_v53  ;;  %v1477_v56 = vadd.f32 -1.0, %v1739_v54 }
 0x905   : > { %1150 = vrot.lane.b32.xlu0 %v1142_v55, %s1789_s24  ;;  %v1145_v61 = vsel %vm1129_vm11, %v1123_v44, %v1479_v59 }
 0x906   : > { %v1143_v58 = vsel %vm1127_vm3, %v1115_v47, %v1477_v56  ;;  %v1484_v56 = vld [vmem:[%s2057_s6] ss:$0 sm:$0xff] }
 0x907   : > { %1152 = vrot.lane.b32.xlu1 %v1143_v58, %s1789_s24 }
 0x909   : > { %1154 = vrot.lane.b32.xlu0 %v1144_v60, %s1789_s24 }
 0x90b   : > { %1156 = vrot.lane.b32.xlu1 %v1145_v61, %s1789_s24 }
 0x977   : > { %v1151_v62 = vpop.permute.xlu0 %1150 }
 0x978   : > { %v1162_v63 = vadd.f32 %v1151_v62, %v1052_v32 }
 0x979   : > { %v1153_v0 = vpop.permute.xlu1 %1152 }
 0x97a   : > { %v1176_v1 = vmul.f32 1.442695, %v1162_v63  ;;  %v1163_v2 = vadd.f32 %v1153_v0, %v1053_v33  ;;  %vm1172_vm12 = vcmp.gt.f32.partialorder %v1162_v63, 0.0 }
 0x97b   : > { %v1155_v3 = vpop.permute.xlu0 %1154 }
 0x97c   : > { %1740 = vpow2.f32 %v1176_v1  ;;  %v1178_v4 = vmul.f32 1.442695, %v1163_v2  ;;  %v1164_v5 = vadd.f32 %v1155_v3, %v1054_v34  ;;  %vm1173_vm13 = vcmp.gt.f32.partialorder %v1163_v2, 0.0 }
 0x97d   : > { %v1157_v6 = vpop.permute.xlu1 %1156 }
 0x97e   : > { %1742 = vpow2.f32 %v1178_v4  ;;  %v1180_v7 = vmul.f32 1.442695, %v1164_v5  ;;  %v1165_v8 = vadd.f32 %v1157_v6, %v1055_v31  ;;  %vm1174_vm14 = vcmp.gt.f32.partialorder %v1164_v5, 0.0 }
 0x980   : > { %1744 = vpow2.f32 %v1180_v7  ;;  %v1182_v9 = vmul.f32 1.442695, %v1165_v8  ;;  %vm1175_vm15 = vcmp.gt.f32.partialorder %v1165_v8, 0.0 }
 0x982   : > { %1746 = vpow2.f32 %v1182_v9 }
 0x986   : > { %v1741_v10 = vpop.eup %1740 }
 0x987   : > { %v1480_v11 = vadd.f32 -1.0, %v1741_v10 }
 0x988   : > { %v1743_v12 = vpop.eup %1742 }
 0x989   : > { %v1188_v13 = vsel %vm1172_vm12, %v1162_v63, %v1480_v11  ;;  %v1481_v14 = vadd.f32 -1.0, %v1743_v12 }
 0x98a   : > { %v1745_v15 = vpop.eup %1744  ;;  %1196 = vrot.lane.b32.xlu0 %v1188_v13, %s1791_s14 }
 0x98b   : > { %v1189_v16 = vsel %vm1173_vm13, %v1163_v2, %v1481_v14  ;;  %v1482_v17 = vadd.f32 -1.0, %v1745_v15 }
 0x98c   : > { %v1747_v18 = vpop.eup %1746  ;;  %1198 = vrot.lane.b32.xlu1 %v1189_v16, %s1791_s14 }
 0x98d   : > { %v1190_v19 = vsel %vm1174_vm14, %v1164_v5, %v1482_v17  ;;  %v1483_v20 = vadd.f32 -1.0, %v1747_v18 }
 0x98e   : > { %1200 = vrot.lane.b32.xlu0 %v1190_v19, %s1791_s14 }
 0x98f   : > { %v1191_v21 = vsel %vm1175_vm15, %v1165_v8, %v1483_v20 }
 0x990   : > { %1202 = vrot.lane.b32.xlu1 %v1191_v21, %s1791_s14  ;;  %s1794_s14 = smov 12  }
 0x9fc   : > { %v1197_v22 = vpop.permute.xlu0 %1196 }
 0x9fd   : > { %1208 = vst.msk [vmem:[#allocation5 + $0x3] sm:$0xff] %vm341_vm4, %v1197_v22 }
 0x9fe   : > { %v1199_v23 = vpop.permute.xlu1 %1198 }
 0x9ff   : > { %1209 = vst.msk [vmem:[#allocation5 + $0xb] sm:$0xff] %vm341_vm4, %v1199_v23 }
 0xa00   : > { %v1201_v24 = vpop.permute.xlu0 %1200 }
 0xa01   : > { %1210 = vst.msk [vmem:[#allocation5 + $0x13] sm:$0xff] %vm341_vm4, %v1201_v24 }
 0xa02   : > { %v1203_v25 = vpop.permute.xlu1 %1202 }
 0xa03   : > { %1211 = vst.msk [vmem:[#allocation5 + $0x1b] sm:$0xff] %vm341_vm4, %v1203_v25 }
 0xa06   : > { %v1220_v28 = vld [vmem:[#allocation5 + $0x2] ss:$2 sm:$0xff]  ;;  %v1216_v30 = vld [vmem:[#allocation5 + $0x1] ss:$2 sm:$0xff] }
 0xa07   : > { %v1212_v34 = vld [vmem:[#allocation5] ss:$2 sm:$0xff]  ;;  %v1224_v37 = vld [vmem:[#allocation5 + $0x3] ss:$2 sm:$0xff] }
 0xa0a   : > { %v1222_v29 = vld [vmem:[#allocation5 + $0x12] ss:$2 sm:$0xff]  ;;  %v1218_v31 = vld [vmem:[#allocation5 + $0x11] ss:$2 sm:$0xff] }
 0xa0b   : > { %v1678_v32 = vpack.i.bf16 %v1222_v29, %v1220_v28  ;;  %v1673_v33 = vpack.i.bf16 %v1218_v31, %v1216_v30  ;;  %v1320_v35 = vld [vmem:[#allocation5 + $0x20] sm:$0x7]  ;;  %v1214_v45 = vld [vmem:[#allocation5 + $0x10] ss:$2 sm:$0xff] }
 0xa0c   : > { %v1226_v36 = vld [vmem:[#allocation5 + $0x13] ss:$2 sm:$0xff]  ;;  %1322 = vst.msk [vmem:[#allocation5] sm:$0x7] %vm1321_vm5, %v1320_v35 }
 0xa0d   : > { %1679 = vrot.lane.b32.xlu1 %v1678_v32, %s1790_s25  ;;  %1674 = vrot.lane.b32.xlu0 %v1673_v33, %s1789_s24  ;;  %v1683_v38 = vpack.i.bf16 %v1226_v36, %v1224_v37 }
 0xa11   : > { %1684 = vrot.lane.b32.xlu0 %v1683_v38, %s1794_s14 }
 0xa7f   : > { %v1680_v39 = vpop.permute.xlu1 %1679  ;;  %v1675_v40 = vpop.permute.xlu0 %1674 }
 0xa80   : > { %v1677_v41 = vunpack.i.h.bf16 %v1675_v40  ;;  %v1676_v42 = vunpack.i.l.bf16 %v1675_v40  ;;  %v1682_v43 = vunpack.i.h.bf16 %v1680_v39  ;;  %v1681_v44 = vunpack.i.l.bf16 %v1680_v39 }
 0xa82   : > { %v1251_v46 = vsel %vm341_vm4, %v1212_v34, %v1676_v42  ;;  %v1252_v47 = vsel %vm341_vm4, %v1214_v45, %v1677_v41 }
 0xa83   : > { %v1685_v48 = vpop.permute.xlu0 %1684  ;;  %v1253_v51 = vsel %vm394_vm7, %v1251_v46, %v1681_v44  ;;  %v1254_v52 = vsel %vm394_vm7, %v1252_v47, %v1682_v43 }
 0xa84   : > { %v1687_v49 = vunpack.i.h.bf16 %v1685_v48  ;;  %v1686_v50 = vunpack.i.l.bf16 %v1685_v48 }
 0xa86   : > { %v1255_v53 = vsel %vm415_vm8, %v1253_v51, %v1686_v50  ;;  %v1256_v54 = vsel %vm415_vm8, %v1254_v52, %v1687_v49 }
 0xa87   : > { %v1257_v55 = vpack.c.bf16 %v1256_v54, %v1255_v53 }
 0xa89   : > { %1557 = vmatmul.mubr.msk.bf16.vlgmr.msra.gmra.mrb[12].mxu0 %vm1273_vm6, %v1257_v55 }
 0xb5c   : > { %v1311_v57 = vpop.f32.mrb[12].mxu0 }
 0xb5d   : > { %v1312_v58 = vadd.f32 %v1484_v56, %v1311_v57  ;;  %v1558_v59 = vpop.f32.mrb[13].mxu0 }
 0xb5e   : > { %v1314_v60 = vpop.f32.mrb[14].mxu0 }
 0xb5f   : > { %1318 = vst.msk [vmem:[%s1875_s21] sm:$0xff] %vm394_vm7, %v1312_v58  ;;  %v1315_v61 = vadd.f32 %v1484_v56, %v1314_v60  ;;  %v1559_v62 = vpop.f32.mrb[15].mxu0 }
 0xb61   : > { %1319 = vst.msk [vmem:[%s1875_s21 + $0x8] sm:$0xff] %vm394_vm7, %v1315_v61 }
 0xb62 PF: > { %s17_s28 = sadd.s32 1, %s1786_s28   ;;  %s2059_s24 = smov %s1778_s26 }
 0xb63   : > { %p14_p9 = scmp.ge.s32.totalorder %s17_s28, 6   ;;  %s2060_s25 = smov %s1782_s27 }
 0xb64   : > { %s2061_s26 = smov %s2064_s29  ;;  %s2062_s27 = smov %s2068_s30 }
 0xb65   :  { %16 = sbr.rel (!%p14_p9) target bundleno = 3 (0x3), region = 97 }

</bundles_post_ra>
